<compile_context>
chip_gen: v6e
topology: v6e:2x2x1
jax: 0.10.0
libtpu: 0.0.40
codegen_flags: <defaults>
</compile_context>

<pallas_src>
import functools

import jax
import jax.numpy as jnp
import numpy as np
from jax.experimental import pallas as pl
from jax.experimental.pallas import tpu as pltpu  # noqa: F401  (TPU backend)

# ---- small, TPU-friendly hyper-parameters (module leaves these free) --------
SEQ_LEN = 8
BATCH = 32            # matches batch_size in the PyTorch file
INPUT_SIZE = 256
HIDDEN = 128
ADAPT_RATE = 0.2      # SimpleRNN defaults
RECOV_RATE = 0.1
NONLINEARITY = "tanh"  # module default


# -----------------------------------------------------------------------------
# Kernel: full SimpleRNN forward in one invocation.
#   inputs : x [T, B, I], h0 [B, H], w_ih [H, I], w_hh [H, H], b [1, H]
#   outputs: out [T, B, H], h_final [B, H]
# -----------------------------------------------------------------------------
def _simple_rnn_kernel(x_ref, h0_ref, wih_ref, whh_ref, b_ref,
                       out_ref, hx_ref, *, nonlinearity):
    T, B, I = x_ref.shape
    H = whh_ref.shape[0]

    # Batched input projection: one MXU launch over all T frames.
    #   (T*B, I) contracted with w_ih (H, I) on the last axes  ==  x @ W_ih^T
    x_all = x_ref[...].reshape(T * B, I)
    pre_x = jax.lax.dot_general(
        x_all, wih_ref[...],
        dimension_numbers=(((1,), (1,)), ((), ())),
        preferred_element_type=jnp.float32,
    ) + b_ref[...]
    pre_x = pre_x.reshape(T, B, H)

    if nonlinearity == "tanh":
        act = jnp.tanh
    else:  # 'relu'
        act = lambda v: jnp.maximum(v, 0.0)

    hx = h0_ref[...]
    adaptation = jnp.zeros((B, H), jnp.float32)

    # Sequential recurrence: statically unrolled (T is small & known at trace
    # time). Only the tiny [B,H]@[H,H] matmul remains on the critical path.
    for t in range(T):
        rec = jax.lax.dot_general(
            hx, whh_ref[...],
            dimension_numbers=(((1,), (1,)), ((), ())),     # hx @ W_hh^T
            preferred_element_type=jnp.float32,
        )
        pre = pre_x[t] + rec
        adapted = jnp.maximum(pre - adaptation, 0.0)
        adaptation = adaptation + ADAPT_RATE * adapted
        adaptation = adaptation - RECOV_RATE * adaptation
        hx = act(adapted)
        out_ref[t] = hx          # static-offset, lane-dense store

    hx_ref[...] = hx


def simple_rnn_forward(x, w_ih, w_hh, b_ih, b_hh, hx=None, *,
                       nonlinearity="tanh", batch_first=False):
    """JAX/Pallas equivalent of SimpleRNN.forward. Returns (output, h_final)."""
    if batch_first:
        x = jnp.transpose(x, (1, 0, 2))
    T, B, _ = x.shape
    H = w_ih.shape[0]
    if hx is None:
        hx = jnp.zeros((B, H), jnp.float32)
    b = (b_ih + b_hh).reshape(1, H)   # fold both biases once, at trace time

    out, h_final = pl.pallas_call(
        functools.partial(_simple_rnn_kernel, nonlinearity=nonlinearity),
        out_shape=(jax.ShapeDtypeStruct((T, B, H), jnp.float32),
                   jax.ShapeDtypeStruct((B, H), jnp.float32)),
    )(x, hx, w_ih, w_hh, b)

    if batch_first:
        out = jnp.transpose(out, (1, 0, 2))
    return out, h_final


# -----------------------------------------------------------------------------
# Pure-JAX reference (mirrors the PyTorch loop exactly) for correctness check.
# -----------------------------------------------------------------------------
def reference_forward(x, w_ih, w_hh, b_ih, b_hh, hx=None, *,
                      nonlinearity="tanh", batch_first=False):
    if batch_first:
        x = jnp.transpose(x, (1, 0, 2))
    T, B, _ = x.shape
    H = w_ih.shape[0]
    if hx is None:
        hx = jnp.zeros((B, H), jnp.float32)
    adaptation = jnp.zeros_like(hx)
    hp = jax.lax.Precision.HIGHEST
    act = jnp.tanh if nonlinearity == "tanh" else (lambda v: jnp.maximum(v, 0.0))
    outs = []
    for t in range(T):
        pre = (jnp.dot(x[t], w_ih.T, precision=hp) + b_ih
               + jnp.dot(hx, w_hh.T, precision=hp) + b_hh)
        adapted = jnp.maximum(pre - adaptation, 0.0)
        adaptation = adaptation + ADAPT_RATE * adapted
        adaptation = adaptation - RECOV_RATE * adaptation
        hx = act(adapted)
        outs.append(hx)
    out = jnp.stack(outs, axis=0)
    if batch_first:
        out = jnp.transpose(out, (1, 0, 2))
    return out, hx


if __name__ == "__main__":
    key = jax.random.PRNGKey(0)
    kx, k1, k2, k3, k4 = jax.random.split(key, 5)
    stdv = 1.0 / np.sqrt(HIDDEN)

    # PyTorch-layout parameters (reset_parameters: uniform(-stdv, stdv)).
    w_ih = jax.random.uniform(k1, (HIDDEN, INPUT_SIZE), jnp.float32, -stdv, stdv)
    w_hh = jax.random.uniform(k2, (HIDDEN, HIDDEN), jnp.float32, -stdv, stdv)
    b_ih = jax.random.uniform(k3, (HIDDEN,), jnp.float32, -stdv, stdv)
    b_hh = jax.random.uniform(k4, (HIDDEN,), jnp.float32, -stdv, stdv)

    # batch_first=False (module default): x is [seq_len, batch, input_size].
    x = jax.random.normal(kx, (SEQ_LEN, BATCH, INPUT_SIZE), jnp.float32)

    out, h_final = jax.block_until_ready(
        simple_rnn_forward(x, w_ih, w_hh, b_ih, b_hh,
                           nonlinearity=NONLINEARITY, batch_first=False))

    assert out.shape == (SEQ_LEN, BATCH, HIDDEN)
    assert h_final.shape == (BATCH, HIDDEN)

    ref_out, ref_h = jax.block_until_ready(
        reference_forward(x, w_ih, w_hh, b_ih, b_hh,
                          nonlinearity=NONLINEARITY, batch_first=False))

    np.testing.assert_allclose(np.asarray(out), np.asarray(ref_out),
                               rtol=2e-2, atol=2e-3)
    np.testing.assert_allclose(np.asarray(h_final), np.asarray(ref_h),
                               rtol=2e-2, atol=2e-3)

    print("KERNEL_OK")
</pallas_src>

<mosaic_0001>
module attributes {stable_mosaic.version = 11 : i64} {
  func.func @_simple_rnn_kernel(%arg0: memref<8x32x256xf32, #tpu.memory_space<vmem>>, %arg1: memref<32x128xf32, #tpu.memory_space<vmem>>, %arg2: memref<128x256xf32, #tpu.memory_space<vmem>>, %arg3: memref<128x128xf32, #tpu.memory_space<vmem>>, %arg4: memref<1x128xf32, #tpu.memory_space<vmem>>, %arg5: memref<8x32x128xf32, #tpu.memory_space<vmem>>, %arg6: memref<32x128xf32, #tpu.memory_space<vmem>>) attributes {dimension_semantics = [], scalar_prefetch = 0 : i64, scratch_operands = 0 : i64, tpu.core_type = #tpu.core_type<tc>} {
    %c0 = arith.constant 0 : index
    %c0_0 = arith.constant 0 : index
    %c0_1 = arith.constant 0 : index
    %0 = vector.load %arg0[%c0, %c0_0, %c0_1] : memref<8x32x256xf32, #tpu.memory_space<vmem>>, vector<8x32x256xf32>
    %1 = vector.shape_cast %0 : vector<8x32x256xf32> to vector<256x256xf32>
    %c0_2 = arith.constant 0 : index
    %c0_3 = arith.constant 0 : index
    %2 = vector.load %arg2[%c0_2, %c0_3] : memref<128x256xf32, #tpu.memory_space<vmem>>, vector<128x256xf32>
    %cst = arith.constant dense<0.000000e+00> : vector<256x128xf32>
    %3 = tpu.matmul %1, %2, %cst {dimension_numbers = #tpu.dot_dimension_numbers<[1], [1], [0], [0], [0, 0, 1, 0], [], []>} : vector<256x256xf32>, vector<128x256xf32>, vector<256x128xf32> -> vector<256x128xf32>
    %c0_4 = arith.constant 0 : index
    %c0_5 = arith.constant 0 : index
    %4 = vector.load %arg4[%c0_4, %c0_5] : memref<1x128xf32, #tpu.memory_space<vmem>>, vector<1x128xf32>
    %5 = vector.broadcast %4 : vector<1x128xf32> to vector<256x128xf32>
    %6 = arith.addf %3, %5 : vector<256x128xf32>
    %7 = vector.shape_cast %6 : vector<256x128xf32> to vector<8x32x128xf32>
    %c0_6 = arith.constant 0 : index
    %c0_7 = arith.constant 0 : index
    %8 = vector.load %arg1[%c0_6, %c0_7] : memref<32x128xf32, #tpu.memory_space<vmem>>, vector<32x128xf32>
    %cst_8 = arith.constant 0.000000e+00 : f32
    %9 = vector.broadcast %cst_8 : f32 to vector<32x128xf32>
    %c0_9 = arith.constant 0 : index
    %c0_10 = arith.constant 0 : index
    %10 = vector.load %arg3[%c0_9, %c0_10] : memref<128x128xf32, #tpu.memory_space<vmem>>, vector<128x128xf32>
    %cst_11 = arith.constant dense<0.000000e+00> : vector<32x128xf32>
    %11 = tpu.matmul %8, %10, %cst_11 {dimension_numbers = #tpu.dot_dimension_numbers<[1], [1], [0], [0], [0, 0, 1, 0], [], []>} : vector<32x128xf32>, vector<128x128xf32>, vector<32x128xf32> -> vector<32x128xf32>
    %12 = vector.extract_strided_slice %7 {offsets = [0, 0, 0], sizes = [1, 32, 128], strides = [1, 1, 1]} : vector<8x32x128xf32> to vector<1x32x128xf32>
    %13 = vector.shape_cast %12 : vector<1x32x128xf32> to vector<32x128xf32>
    %14 = arith.addf %13, %11 : vector<32x128xf32>
    %15 = arith.subf %14, %9 : vector<32x128xf32>
    %cst_12 = arith.constant 0.000000e+00 : f32
    %16 = vector.broadcast %cst_12 : f32 to vector<32x128xf32>
    %17 = arith.maximumf %15, %16 : vector<32x128xf32>
    %cst_13 = arith.constant 2.000000e-01 : f32
    %18 = vector.broadcast %cst_13 : f32 to vector<32x128xf32>
    %19 = arith.mulf %18, %17 : vector<32x128xf32>
    %20 = arith.addf %9, %19 : vector<32x128xf32>
    %cst_14 = arith.constant 1.000000e-01 : f32
    %21 = vector.broadcast %cst_14 : f32 to vector<32x128xf32>
    %22 = arith.mulf %21, %20 : vector<32x128xf32>
    %23 = arith.subf %20, %22 : vector<32x128xf32>
    %24 = math.tanh %17 : vector<32x128xf32>
    %c0_15 = arith.constant 0 : index
    %c0_16 = arith.constant 0 : index
    %c0_17 = arith.constant 0 : index
    %25 = vector.load %arg5[%c0_15, %c0_16, %c0_17] : memref<8x32x128xf32, #tpu.memory_space<vmem>>, vector<1x32x128xf32>
    %26 = vector.shape_cast %25 : vector<1x32x128xf32> to vector<32x128xf32>
    %27 = vector.shape_cast %24 : vector<32x128xf32> to vector<1x32x128xf32>
    tpu.vector_store %arg5[%c0_15, %c0_16, %c0_17], %27 {strides = array<i32>} : memref<8x32x128xf32, #tpu.memory_space<vmem>>, vector<1x32x128xf32>,
    %c0_18 = arith.constant 0 : index
    %c0_19 = arith.constant 0 : index
    %28 = vector.load %arg3[%c0_18, %c0_19] : memref<128x128xf32, #tpu.memory_space<vmem>>, vector<128x128xf32>
    %cst_20 = arith.constant dense<0.000000e+00> : vector<32x128xf32>
    %29 = tpu.matmul %24, %28, %cst_20 {dimension_numbers = #tpu.dot_dimension_numbers<[1], [1], [0], [0], [0, 0, 1, 0], [], []>} : vector<32x128xf32>, vector<128x128xf32>, vector<32x128xf32> -> vector<32x128xf32>
    %30 = vector.extract_strided_slice %7 {offsets = [1, 0, 0], sizes = [1, 32, 128], strides = [1, 1, 1]} : vector<8x32x128xf32> to vector<1x32x128xf32>
    %31 = vector.shape_cast %30 : vector<1x32x128xf32> to vector<32x128xf32>
    %32 = arith.addf %31, %29 : vector<32x128xf32>
    %33 = arith.subf %32, %23 : vector<32x128xf32>
    %cst_21 = arith.constant 0.000000e+00 : f32
    %34 = vector.broadcast %cst_21 : f32 to vector<32x128xf32>
    %35 = arith.maximumf %33, %34 : vector<32x128xf32>
    %cst_22 = arith.constant 2.000000e-01 : f32
    %36 = vector.broadcast %cst_22 : f32 to vector<32x128xf32>
    %37 = arith.mulf %36, %35 : vector<32x128xf32>
    %38 = arith.addf %23, %37 : vector<32x128xf32>
    %cst_23 = arith.constant 1.000000e-01 : f32
    %39 = vector.broadcast %cst_23 : f32 to vector<32x128xf32>
    %40 = arith.mulf %39, %38 : vector<32x128xf32>
    %41 = arith.subf %38, %40 : vector<32x128xf32>
    %42 = math.tanh %35 : vector<32x128xf32>
    %c1 = arith.constant 1 : index
    %c0_24 = arith.constant 0 : index
    %c0_25 = arith.constant 0 : index
    %43 = vector.load %arg5[%c1, %c0_24, %c0_25] : memref<8x32x128xf32, #tpu.memory_space<vmem>>, vector<1x32x128xf32>
    %44 = vector.shape_cast %43 : vector<1x32x128xf32> to vector<32x128xf32>
    %45 = vector.shape_cast %42 : vector<32x128xf32> to vector<1x32x128xf32>
    tpu.vector_store %arg5[%c1, %c0_24, %c0_25], %45 {strides = array<i32>} : memref<8x32x128xf32, #tpu.memory_space<vmem>>, vector<1x32x128xf32>,
    %c0_26 = arith.constant 0 : index
    %c0_27 = arith.constant 0 : index
    %46 = vector.load %arg3[%c0_26, %c0_27] : memref<128x128xf32, #tpu.memory_space<vmem>>, vector<128x128xf32>
    %cst_28 = arith.constant dense<0.000000e+00> : vector<32x128xf32>
    %47 = tpu.matmul %42, %46, %cst_28 {dimension_numbers = #tpu.dot_dimension_numbers<[1], [1], [0], [0], [0, 0, 1, 0], [], []>} : vector<32x128xf32>, vector<128x128xf32>, vector<32x128xf32> -> vector<32x128xf32>
    %48 = vector.extract_strided_slice %7 {offsets = [2, 0, 0], sizes = [1, 32, 128], strides = [1, 1, 1]} : vector<8x32x128xf32> to vector<1x32x128xf32>
    %49 = vector.shape_cast %48 : vector<1x32x128xf32> to vector<32x128xf32>
    %50 = arith.addf %49, %47 : vector<32x128xf32>
    %51 = arith.subf %50, %41 : vector<32x128xf32>
    %cst_29 = arith.constant 0.000000e+00 : f32
    %52 = vector.broadcast %cst_29 : f32 to vector<32x128xf32>
    %53 = arith.maximumf %51, %52 : vector<32x128xf32>
    %cst_30 = arith.constant 2.000000e-01 : f32
    %54 = vector.broadcast %cst_30 : f32 to vector<32x128xf32>
    %55 = arith.mulf %54, %53 : vector<32x128xf32>
    %56 = arith.addf %41, %55 : vector<32x128xf32>
    %cst_31 = arith.constant 1.000000e-01 : f32
    %57 = vector.broadcast %cst_31 : f32 to vector<32x128xf32>
    %58 = arith.mulf %57, %56 : vector<32x128xf32>
    %59 = arith.subf %56, %58 : vector<32x128xf32>
    %60 = math.tanh %53 : vector<32x128xf32>
    %c2 = arith.constant 2 : index
    %c0_32 = arith.constant 0 : index
    %c0_33 = arith.constant 0 : index
    %61 = vector.load %arg5[%c2, %c0_32, %c0_33] : memref<8x32x128xf32, #tpu.memory_space<vmem>>, vector<1x32x128xf32>
    %62 = vector.shape_cast %61 : vector<1x32x128xf32> to vector<32x128xf32>
    %63 = vector.shape_cast %60 : vector<32x128xf32> to vector<1x32x128xf32>
    tpu.vector_store %arg5[%c2, %c0_32, %c0_33], %63 {strides = array<i32>} : memref<8x32x128xf32, #tpu.memory_space<vmem>>, vector<1x32x128xf32>,
    %c0_34 = arith.constant 0 : index
    %c0_35 = arith.constant 0 : index
    %64 = vector.load %arg3[%c0_34, %c0_35] : memref<128x128xf32, #tpu.memory_space<vmem>>, vector<128x128xf32>
    %cst_36 = arith.constant dense<0.000000e+00> : vector<32x128xf32>
    %65 = tpu.matmul %60, %64, %cst_36 {dimension_numbers = #tpu.dot_dimension_numbers<[1], [1], [0], [0], [0, 0, 1, 0], [], []>} : vector<32x128xf32>, vector<128x128xf32>, vector<32x128xf32> -> vector<32x128xf32>
    %66 = vector.extract_strided_slice %7 {offsets = [3, 0, 0], sizes = [1, 32, 128], strides = [1, 1, 1]} : vector<8x32x128xf32> to vector<1x32x128xf32>
    %67 = vector.shape_cast %66 : vector<1x32x128xf32> to vector<32x128xf32>
    %68 = arith.addf %67, %65 : vector<32x128xf32>
    %69 = arith.subf %68, %59 : vector<32x128xf32>
    %cst_37 = arith.constant 0.000000e+00 : f32
    %70 = vector.broadcast %cst_37 : f32 to vector<32x128xf32>
    %71 = arith.maximumf %69, %70 : vector<32x128xf32>
    %cst_38 = arith.constant 2.000000e-01 : f32
    %72 = vector.broadcast %cst_38 : f32 to vector<32x128xf32>
    %73 = arith.mulf %72, %71 : vector<32x128xf32>
    %74 = arith.addf %59, %73 : vector<32x128xf32>
    %cst_39 = arith.constant 1.000000e-01 : f32
    %75 = vector.broadcast %cst_39 : f32 to vector<32x128xf32>
    %76 = arith.mulf %75, %74 : vector<32x128xf32>
    %77 = arith.subf %74, %76 : vector<32x128xf32>
    %78 = math.tanh %71 : vector<32x128xf32>
    %c3 = arith.constant 3 : index
    %c0_40 = arith.constant 0 : index
    %c0_41 = arith.constant 0 : index
    %79 = vector.load %arg5[%c3, %c0_40, %c0_41] : memref<8x32x128xf32, #tpu.memory_space<vmem>>, vector<1x32x128xf32>
    %80 = vector.shape_cast %79 : vector<1x32x128xf32> to vector<32x128xf32>
    %81 = vector.shape_cast %78 : vector<32x128xf32> to vector<1x32x128xf32>
    tpu.vector_store %arg5[%c3, %c0_40, %c0_41], %81 {strides = array<i32>} : memref<8x32x128xf32, #tpu.memory_space<vmem>>, vector<1x32x128xf32>,
    %c0_42 = arith.constant 0 : index
    %c0_43 = arith.constant 0 : index
    %82 = vector.load %arg3[%c0_42, %c0_43] : memref<128x128xf32, #tpu.memory_space<vmem>>, vector<128x128xf32>
    %cst_44 = arith.constant dense<0.000000e+00> : vector<32x128xf32>
    %83 = tpu.matmul %78, %82, %cst_44 {dimension_numbers = #tpu.dot_dimension_numbers<[1], [1], [0], [0], [0, 0, 1, 0], [], []>} : vector<32x128xf32>, vector<128x128xf32>, vector<32x128xf32> -> vector<32x128xf32>
    %84 = vector.extract_strided_slice %7 {offsets = [4, 0, 0], sizes = [1, 32, 128], strides = [1, 1, 1]} : vector<8x32x128xf32> to vector<1x32x128xf32>
    %85 = vector.shape_cast %84 : vector<1x32x128xf32> to vector<32x128xf32>
    %86 = arith.addf %85, %83 : vector<32x128xf32>
    %87 = arith.subf %86, %77 : vector<32x128xf32>
    %cst_45 = arith.constant 0.000000e+00 : f32
    %88 = vector.broadcast %cst_45 : f32 to vector<32x128xf32>
    %89 = arith.maximumf %87, %88 : vector<32x128xf32>
    %cst_46 = arith.constant 2.000000e-01 : f32
    %90 = vector.broadcast %cst_46 : f32 to vector<32x128xf32>
    %91 = arith.mulf %90, %89 : vector<32x128xf32>
    %92 = arith.addf %77, %91 : vector<32x128xf32>
    %cst_47 = arith.constant 1.000000e-01 : f32
    %93 = vector.broadcast %cst_47 : f32 to vector<32x128xf32>
    %94 = arith.mulf %93, %92 : vector<32x128xf32>
    %95 = arith.subf %92, %94 : vector<32x128xf32>
    %96 = math.tanh %89 : vector<32x128xf32>
    %c4 = arith.constant 4 : index
    %c0_48 = arith.constant 0 : index
    %c0_49 = arith.constant 0 : index
    %97 = vector.load %arg5[%c4, %c0_48, %c0_49] : memref<8x32x128xf32, #tpu.memory_space<vmem>>, vector<1x32x128xf32>
    %98 = vector.shape_cast %97 : vector<1x32x128xf32> to vector<32x128xf32>
    %99 = vector.shape_cast %96 : vector<32x128xf32> to vector<1x32x128xf32>
    tpu.vector_store %arg5[%c4, %c0_48, %c0_49], %99 {strides = array<i32>} : memref<8x32x128xf32, #tpu.memory_space<vmem>>, vector<1x32x128xf32>,
    %c0_50 = arith.constant 0 : index
    %c0_51 = arith.constant 0 : index
    %100 = vector.load %arg3[%c0_50, %c0_51] : memref<128x128xf32, #tpu.memory_space<vmem>>, vector<128x128xf32>
    %cst_52 = arith.constant dense<0.000000e+00> : vector<32x128xf32>
    %101 = tpu.matmul %96, %100, %cst_52 {dimension_numbers = #tpu.dot_dimension_numbers<[1], [1], [0], [0], [0, 0, 1, 0], [], []>} : vector<32x128xf32>, vector<128x128xf32>, vector<32x128xf32> -> vector<32x128xf32>
    %102 = vector.extract_strided_slice %7 {offsets = [5, 0, 0], sizes = [1, 32, 128], strides = [1, 1, 1]} : vector<8x32x128xf32> to vector<1x32x128xf32>
    %103 = vector.shape_cast %102 : vector<1x32x128xf32> to vector<32x128xf32>
    %104 = arith.addf %103, %101 : vector<32x128xf32>
    %105 = arith.subf %104, %95 : vector<32x128xf32>
    %cst_53 = arith.constant 0.000000e+00 : f32
    %106 = vector.broadcast %cst_53 : f32 to vector<32x128xf32>
    %107 = arith.maximumf %105, %106 : vector<32x128xf32>
    %cst_54 = arith.constant 2.000000e-01 : f32
    %108 = vector.broadcast %cst_54 : f32 to vector<32x128xf32>
    %109 = arith.mulf %108, %107 : vector<32x128xf32>
    %110 = arith.addf %95, %109 : vector<32x128xf32>
    %cst_55 = arith.constant 1.000000e-01 : f32
    %111 = vector.broadcast %cst_55 : f32 to vector<32x128xf32>
    %112 = arith.mulf %111, %110 : vector<32x128xf32>
    %113 = arith.subf %110, %112 : vector<32x128xf32>
    %114 = math.tanh %107 : vector<32x128xf32>
    %c5 = arith.constant 5 : index
    %c0_56 = arith.constant 0 : index
    %c0_57 = arith.constant 0 : index
    %115 = vector.load %arg5[%c5, %c0_56, %c0_57] : memref<8x32x128xf32, #tpu.memory_space<vmem>>, vector<1x32x128xf32>
    %116 = vector.shape_cast %115 : vector<1x32x128xf32> to vector<32x128xf32>
    %117 = vector.shape_cast %114 : vector<32x128xf32> to vector<1x32x128xf32>
    tpu.vector_store %arg5[%c5, %c0_56, %c0_57], %117 {strides = array<i32>} : memref<8x32x128xf32, #tpu.memory_space<vmem>>, vector<1x32x128xf32>,
    %c0_58 = arith.constant 0 : index
    %c0_59 = arith.constant 0 : index
    %118 = vector.load %arg3[%c0_58, %c0_59] : memref<128x128xf32, #tpu.memory_space<vmem>>, vector<128x128xf32>
    %cst_60 = arith.constant dense<0.000000e+00> : vector<32x128xf32>
    %119 = tpu.matmul %114, %118, %cst_60 {dimension_numbers = #tpu.dot_dimension_numbers<[1], [1], [0], [0], [0, 0, 1, 0], [], []>} : vector<32x128xf32>, vector<128x128xf32>, vector<32x128xf32> -> vector<32x128xf32>
    %120 = vector.extract_strided_slice %7 {offsets = [6, 0, 0], sizes = [1, 32, 128], strides = [1, 1, 1]} : vector<8x32x128xf32> to vector<1x32x128xf32>
    %121 = vector.shape_cast %120 : vector<1x32x128xf32> to vector<32x128xf32>
    %122 = arith.addf %121, %119 : vector<32x128xf32>
    %123 = arith.subf %122, %113 : vector<32x128xf32>
    %cst_61 = arith.constant 0.000000e+00 : f32
    %124 = vector.broadcast %cst_61 : f32 to vector<32x128xf32>
    %125 = arith.maximumf %123, %124 : vector<32x128xf32>
    %cst_62 = arith.constant 2.000000e-01 : f32
    %126 = vector.broadcast %cst_62 : f32 to vector<32x128xf32>
    %127 = arith.mulf %126, %125 : vector<32x128xf32>
    %128 = arith.addf %113, %127 : vector<32x128xf32>
    %cst_63 = arith.constant 1.000000e-01 : f32
    %129 = vector.broadcast %cst_63 : f32 to vector<32x128xf32>
    %130 = arith.mulf %129, %128 : vector<32x128xf32>
    %131 = arith.subf %128, %130 : vector<32x128xf32>
    %132 = math.tanh %125 : vector<32x128xf32>
    %c6 = arith.constant 6 : index
    %c0_64 = arith.constant 0 : index
    %c0_65 = arith.constant 0 : index
    %133 = vector.load %arg5[%c6, %c0_64, %c0_65] : memref<8x32x128xf32, #tpu.memory_space<vmem>>, vector<1x32x128xf32>
    %134 = vector.shape_cast %133 : vector<1x32x128xf32> to vector<32x128xf32>
    %135 = vector.shape_cast %132 : vector<32x128xf32> to vector<1x32x128xf32>
    tpu.vector_store %arg5[%c6, %c0_64, %c0_65], %135 {strides = array<i32>} : memref<8x32x128xf32, #tpu.memory_space<vmem>>, vector<1x32x128xf32>,
    %c0_66 = arith.constant 0 : index
    %c0_67 = arith.constant 0 : index
    %136 = vector.load %arg3[%c0_66, %c0_67] : memref<128x128xf32, #tpu.memory_space<vmem>>, vector<128x128xf32>
    %cst_68 = arith.constant dense<0.000000e+00> : vector<32x128xf32>
    %137 = tpu.matmul %132, %136, %cst_68 {dimension_numbers = #tpu.dot_dimension_numbers<[1], [1], [0], [0], [0, 0, 1, 0], [], []>} : vector<32x128xf32>, vector<128x128xf32>, vector<32x128xf32> -> vector<32x128xf32>
    %138 = vector.extract_strided_slice %7 {offsets = [7, 0, 0], sizes = [1, 32, 128], strides = [1, 1, 1]} : vector<8x32x128xf32> to vector<1x32x128xf32>
    %139 = vector.shape_cast %138 : vector<1x32x128xf32> to vector<32x128xf32>
    %140 = arith.addf %139, %137 : vector<32x128xf32>
    %141 = arith.subf %140, %131 : vector<32x128xf32>
    %cst_69 = arith.constant 0.000000e+00 : f32
    %142 = vector.broadcast %cst_69 : f32 to vector<32x128xf32>
    %143 = arith.maximumf %141, %142 : vector<32x128xf32>
    %144 = math.tanh %143 : vector<32x128xf32>
    %c7 = arith.constant 7 : index
    %c0_70 = arith.constant 0 : index
    %c0_71 = arith.constant 0 : index
    %145 = vector.load %arg5[%c7, %c0_70, %c0_71] : memref<8x32x128xf32, #tpu.memory_space<vmem>>, vector<1x32x128xf32>
    %146 = vector.shape_cast %145 : vector<1x32x128xf32> to vector<32x128xf32>
    %147 = vector.shape_cast %144 : vector<32x128xf32> to vector<1x32x128xf32>
    tpu.vector_store %arg5[%c7, %c0_70, %c0_71], %147 {strides = array<i32>} : memref<8x32x128xf32, #tpu.memory_space<vmem>>, vector<1x32x128xf32>,
    %c0_72 = arith.constant 0 : index
    %c0_73 = arith.constant 0 : index
    %148 = vector.load %arg6[%c0_72, %c0_73] : memref<32x128xf32, #tpu.memory_space<vmem>>, vector<32x128xf32>
    tpu.vector_store %arg6[%c0_72, %c0_73], %144 {strides = array<i32>} : memref<32x128xf32, #tpu.memory_space<vmem>>, vector<32x128xf32>,
    return
  }
}

</mosaic_0001>

<bundles_post_ra>
// kernel: tpu_custom_call.1
= control target key start
LH: loop header
LB: loop body
LE: loop exit
PB: predicated region body
PF: predicated region fallthrough
CT: control target
= control target key end

     0   :  { %12 = vsyncpa [#allocation3], 0  ;;  %s2808_s0 = inlined_call_operand.hbm [shape: f32[8,32,256], index: 0, kind: input, shape index: {}]   ;;  %s2809_s1 = inlined_call_operand.hbm [shape: f32[32,128], index: 1, kind: input, shape index: {}]   ;;  %s2810_s2 = inlined_call_operand.hbm [shape: f32[128,256], index: 2, kind: input, shape index: {}]   ;;  %s2811_s3 = inlined_call_operand.hbm [shape: f32[128,128], index: 3, kind: input, shape index: {}]   ;;  %s2812_s4 = inlined_call_operand.vmem [shape: f32[1,128], index: 4, kind: input, shape index: {}]   ;;  %s2813_s5 = inlined_call_operand.hbm [shape: f32[8,32,128], index: 5, kind: output, shape index: {0}]   ;;  %s2814_s6 = inlined_call_operand.hbm [shape: f32[32,128], index: 6, kind: output, shape index: {1}]  }
   0x1   :  { %13 = vsyncpa [#allocation6], 0 }
   0x2   :  { %14 = vsyncpa [#allocation9], 0 }
   0x3   :  { %15 = vsyncpa [#allocation4], 0 }
   0x4   :  { %16 = vsyncpa [#allocation12], 0  ;;  %s2203_s21 = smov [#allocation5]  }
   0x5   :  { %s34_s22 = sshll.u32 %s2203_s21, 4  ;;  %s35_s22 = int_to_ptr.vmem [resolvable:$true] %s34_s22 }
   0x6   :  { %s2081_s23 = scalar_lea.vmem %s35_s22, 512  ;;  %p2086_p1 = scmp.lt.s32.totalorder %s35_s22, %s35_s22 }
   0x7   :  { %p2082_p0 = scmp.ne.s32.totalorder %s35_s22, %s2081_s23  ;;  %p2087_p2 = scmp.lt.s32.totalorder %s2081_s23, %s2081_s23 }
   0x9   :  { %p2088_p3 = por %p2087_p2, %p2086_p1 }
   0xb   :  { %p2089_p4 = pnand %p2088_p3, %p2082_p0 }
   0xd   :  { %2092 = shalt.err (!%p2089_p4)
}
   0xe   :  { %s2204_s24 = smov 128   ;;  %s2205_s25 = smov 8  }
   0xf   :  { %40 = dma.hbm_to_vmem [thread:$0]  %s2809_s1, 512, %s35_s22, [#allocation6], %s2204_s24, %s2204_s24, %s2205_s25  }
  0x10   :  { %s2206_s28 = smov [#allocation2]  }
  0x11   :  { %s22_s29 = sshll.u32 %s2206_s28, 4  ;;  %s23_s29 = int_to_ptr.vmem [resolvable:$true] %s22_s29 }
  0x12   :  { %s2101_s30 = scalar_lea.vmem %s23_s29, 8192  ;;  %p2106_p6 = scmp.lt.s32.totalorder %s23_s29, %s23_s29 }
  0x13   :  { %p2102_p5 = scmp.ne.s32.totalorder %s23_s29, %s2101_s30  ;;  %p2107_p7 = scmp.lt.s32.totalorder %s2101_s30, %s2101_s30 }
  0x15   :  { %p2108_p8 = por %p2107_p7, %p2106_p6 }
  0x17   :  { %p2109_p9 = pnand %p2108_p8, %p2102_p5 }
  0x19   :  { %2112 = shalt.err (!%p2109_p9)
}
  0x1a   :  { %s2207_s7 = smov 256   ;;  %s2208_s8 = smov 16  }
  0x1b   :  { %28 = dma.hbm_to_vmem [thread:$0]  %s2808_s0, 8192, %s23_s29, [#allocation3], %s2207_s7, %s2207_s7, %s2208_s8  }
  0x1c   :  { %s2209_s11 = smov [#allocation7]   ;;  %s2210_s13 = smov [#allocation8]  }
  0x1d   :  { %s46_s12 = sshll.u32 %s2209_s11, 4  ;;  %s58_s1 = sshll.u32 %s2210_s13, 4  ;;  %s47_s12 = int_to_ptr.vmem [resolvable:$true] %s46_s12  ;;  %s59_s1 = int_to_ptr.vmem [resolvable:$true] %s58_s1 }
  0x1e   :  { %s2121_s14 = scalar_lea.vmem %s47_s12, 4096  ;;  %p2126_p11 = scmp.lt.s32.totalorder %s47_s12, %s47_s12 }
  0x1f   :  { %p2122_p10 = scmp.ne.s32.totalorder %s47_s12, %s2121_s14  ;;  %p2127_p12 = scmp.lt.s32.totalorder %s2121_s14, %s2121_s14 }
  0x21   :  { %p2128_p13 = por %p2127_p12, %p2126_p11 }
  0x23   :  { %p2129_p0 = pnand %p2128_p13, %p2122_p10 }
  0x25   :  { %2132 = shalt.err (!%p2129_p0)
}
  0x26   :  { %52 = dma.hbm_to_vmem [thread:$0]  %s2810_s2, 4096, %s47_s12, [#allocation6], %s2207_s7, %s2207_s7, %s2208_s8  }
  0x27   :  { %s2141_s17 = scalar_lea.vmem %s59_s1, 2048  ;;  %p2146_p2 = scmp.lt.s32.totalorder %s59_s1, %s59_s1 }
  0x28   :  { %p2142_p1 = scmp.ne.s32.totalorder %s59_s1, %s2141_s17  ;;  %p2147_p3 = scmp.lt.s32.totalorder %s2141_s17, %s2141_s17 }
  0x2a   :  { %p2148_p4 = por %p2147_p3, %p2146_p2 }
  0x2c   :  { %p2149_p5 = pnand %p2148_p4, %p2142_p1 }
  0x2e   :  { %2152 = shalt.err (!%p2149_p5)
}
  0x2f   :  { %64 = dma.hbm_to_vmem [thread:$0]  %s2811_s3, 2048, %s59_s1, [#allocation9], %s2204_s24, %s2204_s24, %s2205_s25  }
  0x30   :  { %2193 = dma.done.wait [#allocation3], 8192  }
  0x31   :  { %2194 = vsyncadd [#allocation3], 4294959104 }
  0x32   :  { %2195 = dma.done.wait [#allocation6], 4608  }
  0x33   :  { %2196 = vsyncadd [#allocation6], 4294962688 }
  0x34   :  { %2197 = dma.done.wait [#allocation9], 2048  }
  0x35   :  { %2198 = vsyncadd [#allocation9], 4294965248  ;;  %v174_v0 = vld [vmem:[#allocation7 + $0xf8] sm:$0xff]  ;;  %v173_v2 = vld [vmem:[#allocation7 + $0xf0] sm:$0xff]  ;;  %s2212_s22 = smov [#allocation11]  }
  0x36   :  { %v2266_v1 = vld [vmem:[#allocation8 + $0x78] sm:$0xff]  ;;  %182 = vmatprep.subr.mxu0 %v174_v0  ;;  %v172_v3 = vld [vmem:[#allocation7 + $0xe8] sm:$0xff]  ;;  %v2269_v4 = vld [vmem:[#allocation8 + $0x70] sm:$0xff]  ;;  %s1515_s23 = sshll.u32 %s2212_s22, 4  ;;  %s1516_s23 = int_to_ptr.vmem [resolvable:$true] %s1515_s23 }
  0x37   :  { %1694 = vmatprep.subr.mxu1 %v2266_v1  ;;  %183 = vmatpush1.xpose.msra.mxu0 %v173_v2  ;;  %v171_v5 = vld [vmem:[#allocation7 + $0xe0] sm:$0xff]  ;;  %v170_v6 = vld [vmem:[#allocation7 + $0xd8] sm:$0xff]  ;;  %v2273_v7 = vld [vmem:[#allocation8 + $0x68] sm:$0xff] }
  0x38   :  { %1695 = vmatpush3.xpose.msra.mxu1 %v2266_v1  ;;  %184 = vmatprep.subr.mxu0 %v172_v3  ;;  %v169_v8 = vld [vmem:[#allocation7 + $0xd0] sm:$0xff]  ;;  %v168_v9 = vld [vmem:[#allocation7 + $0xc8] sm:$0xff]  ;;  %v2277_v10 = vld [vmem:[#allocation8 + $0x60] sm:$0xff] }
  0x39   :  { %1696 = vmatprep.subr.mxu1 %v2269_v4  ;;  %v167_v11 = vld [vmem:[#allocation7 + $0xc0] sm:$0xff]  ;;  %v166_v12 = vld [vmem:[#allocation7 + $0xb8] sm:$0xff]  ;;  %v165_v14 = vld [vmem:[#allocation7 + $0xb0] sm:$0xff] }
  0x3a   :  { %v2281_v13 = vld [vmem:[#allocation8 + $0x58] sm:$0xff]  ;;  %v164_v15 = vld [vmem:[#allocation7 + $0xa8] sm:$0xff]  ;;  %v2285_v16 = vld [vmem:[#allocation8 + $0x50] sm:$0xff] }
  0x3b   :  { %185 = vmatpush1.xpose.msra.mxu0 %v171_v5  ;;  %v80_v17 = vld [vmem:[#allocation2 + $0x8] sm:$0xff]  ;;  %v407_v18 = vld [vmem:[#allocation5] sm:$0xff]  ;;  %v162_v20 = vld [vmem:[#allocation7 + $0x98] sm:$0xff] }
  0x3c   :  { %1697 = vmatpush3.xpose.msra.mxu1 %v2269_v4  ;;  %186 = vmatprep.subr.mxu0 %v170_v6  ;;  %v163_v19 = vld [vmem:[#allocation7 + $0xa0] sm:$0xff]  ;;  %v2289_v21 = vld [vmem:[#allocation8 + $0x48] sm:$0xff]  ;;  %v161_v22 = vld [vmem:[#allocation7 + $0x90] sm:$0xff] }
  0x3d   :  { %1698 = vmatprep.subr.mxu1 %v2273_v7  ;;  %246 = vmatprep.mubr.f32.mxu0 %v80_v17  ;;  %v160_v23 = vld [vmem:[#allocation7 + $0x88] sm:$0xff]  ;;  %v2293_v24 = vld [vmem:[#allocation8 + $0x40] sm:$0xff]  ;;  %v158_v26 = vld [vmem:[#allocation7 + $0x78] sm:$0xff] }
  0x3e   :  { %1726 = vmatprep.mubr.f32.mxu1 %v407_v18  ;;  %v159_v25 = vld [vmem:[#allocation7 + $0x80] sm:$0xff]  ;;  %v2297_v27 = vld [vmem:[#allocation8 + $0x38] sm:$0xff]  ;;  %v157_v28 = vld [vmem:[#allocation7 + $0x70] sm:$0xff] }
  0x3f   :  { %187 = vmatpush1.xpose.msra.mxu0 %v169_v8  ;;  %v156_v29 = vld [vmem:[#allocation7 + $0x68] sm:$0xff]  ;;  %v2301_v30 = vld [vmem:[#allocation8 + $0x30] sm:$0xff]  ;;  %v155_v31 = vld [vmem:[#allocation7 + $0x60] sm:$0xff] }
  0x40   :  { %1699 = vmatpush3.xpose.msra.mxu1 %v2273_v7  ;;  %188 = vmatprep.subr.mxu0 %v168_v9  ;;  %v154_v32 = vld [vmem:[#allocation7 + $0x58] sm:$0xff]  ;;  %v2305_v33 = vld [vmem:[#allocation8 + $0x28] sm:$0xff]  ;;  %v153_v34 = vld [vmem:[#allocation7 + $0x50] sm:$0xff] }
  0x41   :  { %1700 = vmatprep.subr.mxu1 %v2277_v10  ;;  %v152_v35 = vld [vmem:[#allocation7 + $0x48] sm:$0xff]  ;;  %v2309_v36 = vld [vmem:[#allocation8 + $0x20] sm:$0xff]  ;;  %v150_v38 = vld [vmem:[#allocation7 + $0x38] sm:$0xff] }
  0x42   :  { %v151_v37 = vld [vmem:[#allocation7 + $0x40] sm:$0xff]  ;;  %v2313_v39 = vld [vmem:[#allocation8 + $0x18] sm:$0xff]  ;;  %v149_v40 = vld [vmem:[#allocation7 + $0x30] sm:$0xff] }
  0x43   :  { %189 = vmatpush1.xpose.msra.mxu0 %v167_v11  ;;  %v148_v41 = vld [vmem:[#allocation7 + $0x28] sm:$0xff]  ;;  %v2317_v42 = vld [vmem:[#allocation8 + $0x10] sm:$0xff]  ;;  %v147_v43 = vld [vmem:[#allocation7 + $0x20] sm:$0xff] }
  0x44   :  { %1701 = vmatpush3.xpose.msra.mxu1 %v2277_v10  ;;  %190 = vmatprep.subr.mxu0 %v166_v12  ;;  %v146_v44 = vld [vmem:[#allocation7 + $0x18] sm:$0xff]  ;;  %v2321_v45 = vld [vmem:[#allocation8 + $0x8] sm:$0xff]  ;;  %v145_v46 = vld [vmem:[#allocation7 + $0x10] sm:$0xff] }
  0x45   :  { %1702 = vmatprep.subr.mxu1 %v2281_v13  ;;  %v144_v47 = vld [vmem:[#allocation7 + $0x8] sm:$0xff]  ;;  %v2325_v48 = vld [vmem:[#allocation8] sm:$0xff]  ;;  %v82_v52 = vld [vmem:[#allocation2 + $0x18] sm:$0xff] }
  0x46   :  { %v143_v49 = vld [vmem:[#allocation7] sm:$0xff]  ;;  %v408_v51 = vld [vmem:[#allocation5 + $0x8] sm:$0xff]  ;;  %v409_v53 = vld [vmem:[#allocation5 + $0x10] sm:$0xff] }
  0x47   :  { %191 = vmatpush1.xpose.msra.mxu0 %v165_v14  ;;  %v79_v50 = vld [vmem:[#allocation2] sm:$0xff]  ;;  %v81_v54 = vld [vmem:[#allocation2 + $0x10] sm:$0xff]  ;;  %v410_v55 = vld [vmem:[#allocation5 + $0x18] sm:$0xff] }
  0x48   :  { %1703 = vmatpush3.xpose.msra.mxu1 %v2281_v13  ;;  %192 = vmatprep.subr.mxu0 %v164_v15  ;;  %v84_v56 = vld [vmem:[#allocation2 + $0x28] sm:$0xff]  ;;  %v83_v57 = vld [vmem:[#allocation2 + $0x20] sm:$0xff]  ;;  %v86_v58 = vld [vmem:[#allocation2 + $0x38] sm:$0xff] }
  0x49   :  { %1704 = vmatprep.subr.mxu1 %v2285_v16  ;;  %v85_v59 = vld [vmem:[#allocation2 + $0x30] sm:$0xff]  ;;  %v88_v60 = vld [vmem:[#allocation2 + $0x48] sm:$0xff]  ;;  %v87_v61 = vld [vmem:[#allocation2 + $0x40] sm:$0xff] }
  0x4a   :  { %v90_v62 = vld [vmem:[#allocation2 + $0x58] sm:$0xff]  ;;  %v89_v63 = vld [vmem:[#allocation2 + $0x50] sm:$0xff]  ;;  %v92_v0 = vld [vmem:[#allocation2 + $0x68] sm:$0xff] }
  0x4b   :  { %193 = vmatpush1.xpose.msra.mxu0 %v163_v19  ;;  %v91_v2 = vld [vmem:[#allocation2 + $0x60] sm:$0xff]  ;;  %v94_v3 = vld [vmem:[#allocation2 + $0x78] sm:$0xff]  ;;  %v93_v5 = vld [vmem:[#allocation2 + $0x70] sm:$0xff] }
  0x4c   :  { %1705 = vmatpush3.xpose.msra.mxu1 %v2285_v16  ;;  %194 = vmatprep.subr.mxu0 %v162_v20  ;;  %v96_v6 = vld [vmem:[#allocation2 + $0x88] sm:$0xff]  ;;  %v95_v8 = vld [vmem:[#allocation2 + $0x80] sm:$0xff]  ;;  %v98_v9 = vld [vmem:[#allocation2 + $0x98] sm:$0xff] }
  0x4d   :  { %1706 = vmatprep.subr.mxu1 %v2289_v21  ;;  %v97_v11 = vld [vmem:[#allocation2 + $0x90] sm:$0xff]  ;;  %v100_v12 = vld [vmem:[#allocation2 + $0xa8] sm:$0xff]  ;;  %v99_v14 = vld [vmem:[#allocation2 + $0xa0] sm:$0xff] }
  0x4e   :  { %v102_v15 = vld [vmem:[#allocation2 + $0xb8] sm:$0xff]  ;;  %v101_v17 = vld [vmem:[#allocation2 + $0xb0] sm:$0xff]  ;;  %v104_v18 = vld [vmem:[#allocation2 + $0xc8] sm:$0xff] }
  0x4f   :  { %195 = vmatpush1.xpose.msra.mxu0 %v161_v22  ;;  %v103_v19 = vld [vmem:[#allocation2 + $0xc0] sm:$0xff]  ;;  %v106_v20 = vld [vmem:[#allocation2 + $0xd8] sm:$0xff]  ;;  %v105_v22 = vld [vmem:[#allocation2 + $0xd0] sm:$0xff] }
  0x50   :  { %1707 = vmatpush3.xpose.msra.mxu1 %v2289_v21  ;;  %196 = vmatprep.subr.mxu0 %v160_v23  ;;  %v108_v23 = vld [vmem:[#allocation2 + $0xe8] sm:$0xff] }
  0x51   :  { %1708 = vmatprep.subr.mxu1 %v2293_v24 }
  0x53   :  { %197 = vmatpush1.xpose.msra.mxu0 %v159_v25  ;;  %v107_v25 = vld [vmem:[#allocation2 + $0xe0] sm:$0xff] }
  0x54   :  { %1709 = vmatpush3.xpose.msra.mxu1 %v2293_v24  ;;  %198 = vmatprep.subr.mxu0 %v158_v26  ;;  %v110_v26 = vld [vmem:[#allocation2 + $0xf8] sm:$0xff] }
  0x55   :  { %1710 = vmatprep.subr.mxu1 %v2297_v27 }
  0x57   :  { %199 = vmatpush1.xpose.msra.mxu0 %v157_v28  ;;  %v109_v28 = vld [vmem:[#allocation2 + $0xf0] sm:$0xff] }
  0x58   :  { %1711 = vmatpush3.xpose.msra.mxu1 %v2297_v27  ;;  %200 = vmatprep.subr.mxu0 %v156_v29  ;;  %v112_v29 = vld [vmem:[#allocation2 + $0x108] sm:$0xff] }
  0x59   :  { %1712 = vmatprep.subr.mxu1 %v2301_v30 }
  0x5b   :  { %201 = vmatpush1.xpose.msra.mxu0 %v155_v31  ;;  %v111_v31 = vld [vmem:[#allocation2 + $0x100] sm:$0xff] }
  0x5c   :  { %1713 = vmatpush3.xpose.msra.mxu1 %v2301_v30  ;;  %202 = vmatprep.subr.mxu0 %v154_v32  ;;  %v114_v32 = vld [vmem:[#allocation2 + $0x118] sm:$0xff] }
  0x5d   :  { %1714 = vmatprep.subr.mxu1 %v2305_v33 }
  0x5f   :  { %203 = vmatpush1.xpose.msra.mxu0 %v153_v34  ;;  %v113_v34 = vld [vmem:[#allocation2 + $0x110] sm:$0xff] }
  0x60   :  { %1715 = vmatpush3.xpose.msra.mxu1 %v2305_v33  ;;  %204 = vmatprep.subr.mxu0 %v152_v35  ;;  %v116_v35 = vld [vmem:[#allocation2 + $0x128] sm:$0xff] }
  0x61   :  { %1716 = vmatprep.subr.mxu1 %v2309_v36 }
  0x63   :  { %205 = vmatpush1.xpose.msra.mxu0 %v151_v37  ;;  %v115_v37 = vld [vmem:[#allocation2 + $0x120] sm:$0xff] }
  0x64   :  { %1717 = vmatpush3.xpose.msra.mxu1 %v2309_v36  ;;  %206 = vmatprep.subr.mxu0 %v150_v38  ;;  %v118_v38 = vld [vmem:[#allocation2 + $0x138] sm:$0xff] }
  0x65   :  { %1718 = vmatprep.subr.mxu1 %v2313_v39 }
  0x67   :  { %207 = vmatpush1.xpose.msra.mxu0 %v149_v40  ;;  %v117_v40 = vld [vmem:[#allocation2 + $0x130] sm:$0xff] }
  0x68   :  { %1719 = vmatpush3.xpose.msra.mxu1 %v2313_v39  ;;  %208 = vmatprep.subr.mxu0 %v148_v41  ;;  %v120_v41 = vld [vmem:[#allocation2 + $0x148] sm:$0xff] }
  0x69   :  { %1720 = vmatprep.subr.mxu1 %v2317_v42 }
  0x6b   :  { %209 = vmatpush1.xpose.msra.mxu0 %v147_v43  ;;  %v119_v43 = vld [vmem:[#allocation2 + $0x140] sm:$0xff] }
  0x6c   :  { %1721 = vmatpush3.xpose.msra.mxu1 %v2317_v42  ;;  %210 = vmatprep.subr.mxu0 %v146_v44  ;;  %v122_v44 = vld [vmem:[#allocation2 + $0x158] sm:$0xff] }
  0x6d   :  { %1722 = vmatprep.subr.mxu1 %v2321_v45 }
  0x6f   :  { %211 = vmatpush1.xpose.msra.mxu0 %v145_v46  ;;  %v121_v46 = vld [vmem:[#allocation2 + $0x150] sm:$0xff] }
  0x70   :  { %1723 = vmatpush3.xpose.msra.mxu1 %v2321_v45  ;;  %212 = vmatprep.subr.mxu0 %v144_v47  ;;  %v124_v47 = vld [vmem:[#allocation2 + $0x168] sm:$0xff] }
  0x71   :  { %1724 = vmatprep.subr.mxu1 %v2325_v48 }
  0x73   :  { %213 = vmatpush1.xpose.msra.mxu0 %v143_v49  ;;  %v123_v49 = vld [vmem:[#allocation2 + $0x160] sm:$0xff] }
  0x74   :  { %1725 = vmatpush3.xpose.msra.mxu1 %v2325_v48  ;;  %1770 = vmatprep.subr.mxu0 %v2266_v1 }
  0x75   :  { %1732 = vmatprep.subr.mxu1 %v2266_v1 }
  0x76   :  { %247 = vmatmul.mubr.f32.vlgmr.msra.gmra.mxu0 %v79_v50  ;;  %v126_v50 = vld [vmem:[#allocation2 + $0x178] sm:$0xff] }
  0x77   :  { %1727 = vmatmul.mubr.f32.vlgmr.msra.gmra.mxu1 %v408_v51  ;;  %251 = vmatprep.mubr.f32.mxu0 %v82_v52  ;;  %v125_v51 = vld [vmem:[#allocation2 + $0x170] sm:$0xff]  ;;  %v128_v52 = vld [vmem:[#allocation2 + $0x188] sm:$0xff] }
  0x78   :  { %1729 = vmatprep.mubr.f32.mxu1 %v409_v53  ;;  %1733 = vmatpush3.xpose.msra.mxu1 %v2266_v1  ;;  %v127_v53 = vld [vmem:[#allocation2 + $0x180] sm:$0xff] }
  0x79   :  { %1771 = vmatpush3.xpose.msra.mxu0 %v2266_v1  ;;  %1734 = vmatprep.subr.mxu1 %v2269_v4 }
  0x7a   :  { %1772 = vmatprep.subr.mxu0 %v2269_v4  ;;  %252 = vmatmul.mubr.f32.gmra.mxu0 %v81_v54  ;;  %v130_v54 = vld [vmem:[#allocation2 + $0x198] sm:$0xff] }
  0x7b   :  { %1730 = vmatmul.mubr.f32.gmra.mxu1 %v410_v55  ;;  %256 = vmatprep.mubr.f32.mxu0 %v84_v56  ;;  %v129_v55 = vld [vmem:[#allocation2 + $0x190] sm:$0xff]  ;;  %v132_v56 = vld [vmem:[#allocation2 + $0x1a8] sm:$0xff] }
  0x7c   :  { %1735 = vmatpush3.xpose.msra.mxu1 %v2269_v4 }
  0x7d   :  { %1773 = vmatpush3.xpose.msra.mxu0 %v2269_v4  ;;  %1736 = vmatprep.subr.mxu1 %v2273_v7 }
  0x7e   :  { %1774 = vmatprep.subr.mxu0 %v2273_v7  ;;  %257 = vmatmul.mubr.f32.gmra.mxu0 %v83_v57  ;;  %v131_v57 = vld [vmem:[#allocation2 + $0x1a0] sm:$0xff] }
  0x7f   :  { %261 = vmatprep.mubr.f32.mxu0 %v86_v58  ;;  %v2398_v58 = vld [vmem:[%s2812_s4] ss:$0 sm:$0xff] }
  0x80   :  { %1737 = vmatpush3.xpose.msra.mxu1 %v2273_v7 }
  0x81   :  { %1775 = vmatpush3.xpose.msra.mxu0 %v2273_v7  ;;  %1738 = vmatprep.subr.mxu1 %v2277_v10 }
  0x82   :  { %1776 = vmatprep.subr.mxu0 %v2277_v10  ;;  %262 = vmatmul.mubr.f32.gmra.mxu0 %v85_v59 }
  0x83   :  { %266 = vmatprep.mubr.f32.mxu0 %v88_v60 }
  0x84   :  { %1739 = vmatpush3.xpose.msra.mxu1 %v2277_v10 }
  0x85   :  { %1777 = vmatpush3.xpose.msra.mxu0 %v2277_v10  ;;  %1740 = vmatprep.subr.mxu1 %v2281_v13 }
  0x86   :  { %1778 = vmatprep.subr.mxu0 %v2281_v13  ;;  %267 = vmatmul.mubr.f32.gmra.mxu0 %v87_v61 }
  0x87   :  { %271 = vmatprep.mubr.f32.mxu0 %v90_v62 }
  0x88   :  { %1741 = vmatpush3.xpose.msra.mxu1 %v2281_v13 }
  0x89   :  { %1779 = vmatpush3.xpose.msra.mxu0 %v2281_v13  ;;  %1742 = vmatprep.subr.mxu1 %v2285_v16 }
  0x8a   :  { %1780 = vmatprep.subr.mxu0 %v2285_v16  ;;  %272 = vmatmul.mubr.f32.gmra.mxu0 %v89_v63 }
  0x8b   :  { %276 = vmatprep.mubr.f32.mxu0 %v92_v0 }
  0x8c   :  { %1743 = vmatpush3.xpose.msra.mxu1 %v2285_v16 }
  0x8d   :  { %1781 = vmatpush3.xpose.msra.mxu0 %v2285_v16  ;;  %1744 = vmatprep.subr.mxu1 %v2289_v21 }
  0x8e   :  { %1782 = vmatprep.subr.mxu0 %v2289_v21  ;;  %277 = vmatmul.mubr.f32.gmra.mxu0 %v91_v2 }
  0x8f   :  { %281 = vmatprep.mubr.f32.mxu0 %v94_v3 }
  0x90   :  { %1745 = vmatpush3.xpose.msra.mxu1 %v2289_v21 }
  0x91   :  { %1783 = vmatpush3.xpose.msra.mxu0 %v2289_v21  ;;  %1746 = vmatprep.subr.mxu1 %v2293_v24 }
  0x92   :  { %1784 = vmatprep.subr.mxu0 %v2293_v24  ;;  %282 = vmatmul.mubr.f32.gmra.mxu0 %v93_v5 }
  0x93   :  { %286 = vmatprep.mubr.f32.mxu0 %v96_v6 }
  0x94   :  { %1747 = vmatpush3.xpose.msra.mxu1 %v2293_v24 }
  0x95   :  { %1785 = vmatpush3.xpose.msra.mxu0 %v2293_v24  ;;  %1748 = vmatprep.subr.mxu1 %v2297_v27 }
  0x96   :  { %1786 = vmatprep.subr.mxu0 %v2297_v27  ;;  %287 = vmatmul.mubr.f32.gmra.mxu0 %v95_v8 }
  0x97   :  { %291 = vmatprep.mubr.f32.mxu0 %v98_v9 }
  0x98   :  { %1749 = vmatpush3.xpose.msra.mxu1 %v2297_v27 }
  0x99   :  { %1787 = vmatpush3.xpose.msra.mxu0 %v2297_v27  ;;  %1750 = vmatprep.subr.mxu1 %v2301_v30 }
  0x9a   :  { %1788 = vmatprep.subr.mxu0 %v2301_v30  ;;  %292 = vmatmul.mubr.f32.gmra.mxu0 %v97_v11 }
  0x9b   :  { %296 = vmatprep.mubr.f32.mxu0 %v100_v12 }
  0x9c   :  { %1751 = vmatpush3.xpose.msra.mxu1 %v2301_v30 }
  0x9d   :  { %1789 = vmatpush3.xpose.msra.mxu0 %v2301_v30  ;;  %1752 = vmatprep.subr.mxu1 %v2305_v33 }
  0x9e   :  { %1790 = vmatprep.subr.mxu0 %v2305_v33  ;;  %297 = vmatmul.mubr.f32.gmra.mxu0 %v99_v14 }
  0x9f   :  { %301 = vmatprep.mubr.f32.mxu0 %v102_v15 }
  0xa0   :  { %1753 = vmatpush3.xpose.msra.mxu1 %v2305_v33 }
  0xa1   :  { %1791 = vmatpush3.xpose.msra.mxu0 %v2305_v33  ;;  %1754 = vmatprep.subr.mxu1 %v2309_v36 }
  0xa2   :  { %1792 = vmatprep.subr.mxu0 %v2309_v36  ;;  %302 = vmatmul.mubr.f32.gmra.mxu0 %v101_v17 }
  0xa3   :  { %306 = vmatprep.mubr.f32.mxu0 %v104_v18 }
  0xa4   :  { %1755 = vmatpush3.xpose.msra.mxu1 %v2309_v36 }
  0xa5   :  { %1793 = vmatpush3.xpose.msra.mxu0 %v2309_v36  ;;  %1756 = vmatprep.subr.mxu1 %v2313_v39 }
  0xa6   :  { %1794 = vmatprep.subr.mxu0 %v2313_v39  ;;  %307 = vmatmul.mubr.f32.gmra.mxu0 %v103_v19 }
  0xa7   :  { %311 = vmatprep.mubr.f32.mxu0 %v106_v20 }
  0xa8   :  { %1757 = vmatpush3.xpose.msra.mxu1 %v2313_v39 }
  0xa9   :  { %1795 = vmatpush3.xpose.msra.mxu0 %v2313_v39  ;;  %1758 = vmatprep.subr.mxu1 %v2317_v42 }
  0xaa   :  { %1796 = vmatprep.subr.mxu0 %v2317_v42  ;;  %312 = vmatmul.mubr.f32.gmra.mxu0 %v105_v22 }
  0xab   :  { %316 = vmatprep.mubr.f32.mxu0 %v108_v23 }
  0xac   :  { %1759 = vmatpush3.xpose.msra.mxu1 %v2317_v42 }
  0xad   :  { %1797 = vmatpush3.xpose.msra.mxu0 %v2317_v42  ;;  %1760 = vmatprep.subr.mxu1 %v2321_v45 }
  0xae   :  { %1798 = vmatprep.subr.mxu0 %v2321_v45  ;;  %317 = vmatmul.mubr.f32.gmra.mxu0 %v107_v25 }
  0xaf   :  { %321 = vmatprep.mubr.f32.mxu0 %v110_v26 }
  0xb0   :  { %1761 = vmatpush3.xpose.msra.mxu1 %v2321_v45 }
  0xb1   :  { %1799 = vmatpush3.xpose.msra.mxu0 %v2321_v45  ;;  %1762 = vmatprep.subr.mxu1 %v2325_v48 }
  0xb2   :  { %1800 = vmatprep.subr.mxu0 %v2325_v48  ;;  %322 = vmatmul.mubr.f32.gmra.mxu0 %v109_v28 }
  0xb3   :  { %326 = vmatprep.mubr.f32.mxu0 %v112_v29 }
  0xb4   :  { %1763 = vmatpush3.xpose.msra.mxu1 %v2325_v48 }
  0xb5   :  { %1801 = vmatpush3.xpose.msra.mxu0 %v2325_v48  ;;  %1808 = vmatprep.subr.mxu1 %v2266_v1 }
  0xb6   :  { %327 = vmatmul.mubr.f32.gmra.mxu0 %v111_v31 }
  0xb7   :  { %331 = vmatprep.mubr.f32.mxu0 %v114_v32 }
  0xba   :  { %332 = vmatmul.mubr.f32.gmra.mxu0 %v113_v34  ;;  %v142_v34 = vld [vmem:[#allocation2 + $0x1f8] sm:$0xff] }
  0xbb   :  { %336 = vmatprep.mubr.f32.mxu0 %v116_v35  ;;  %v141_v35 = vld [vmem:[#allocation2 + $0x1f0] sm:$0xff] }
  0xbe   :  { %337 = vmatmul.mubr.f32.gmra.mxu0 %v115_v37 }
  0xbf   :  { %341 = vmatprep.mubr.f32.mxu0 %v118_v38 }
  0xc2   :  { %342 = vmatmul.mubr.f32.gmra.mxu0 %v117_v40 }
  0xc3   :  { %346 = vmatprep.mubr.f32.mxu0 %v120_v41 }
  0xc6   :  { %347 = vmatmul.mubr.f32.gmra.mxu0 %v119_v43 }
  0xc7   :  { %351 = vmatprep.mubr.f32.mxu0 %v122_v44 }
  0xca   :  { %352 = vmatmul.mubr.f32.gmra.mxu0 %v121_v46 }
  0xcb   :  { %356 = vmatprep.mubr.f32.mxu0 %v124_v47 }
  0xce   :  { %357 = vmatmul.mubr.f32.gmra.mxu0 %v123_v49 }
  0xcf   :  { %361 = vmatprep.mubr.f32.mxu0 %v126_v50 }
  0xd2   :  { %362 = vmatmul.mubr.f32.gmra.mxu0 %v125_v51 }
  0xd3   :  { %366 = vmatprep.mubr.f32.mxu0 %v128_v52 }
  0xd6   :  { %367 = vmatmul.mubr.f32.gmra.mxu0 %v127_v53 }
  0xd7   :  { %371 = vmatprep.mubr.f32.mxu0 %v130_v54 }
  0xda   :  { %372 = vmatmul.mubr.f32.gmra.mxu0 %v129_v55 }
  0xdb   :  { %376 = vmatprep.mubr.f32.mxu0 %v132_v56 }
  0xde   :  { %377 = vmatmul.mubr.f32.gmra.mxu0 %v131_v57 }
 0x136   :  { %v248_v59 = vpop.f32.mrf.mxu0 }
 0x137   :  { %v1728_v60 = vpop.f32.mrf.mxu1  ;;  %v249_v61 = vadd.f32 %v2398_v58, %v248_v59 }
 0x138   :  { %v250_v62 = vpop.f32.mrf.mxu0 }
 0x139   :  { %v493_v63 = vpop.f32.mrf.mxu1 }
 0x13a   :  { %v2401_v0 = vadd.f32 %v493_v63, %v249_v61  ;;  %v253_v2 = vpop.f32.mrf.mxu0 }
 0x13b   :  { %v1731_v3 = vpop.f32.mrf.mxu1  ;;  %v254_v6 = vadd.f32 %v2398_v58, %v253_v2 }
 0x13c   :  { %v516_v5 = vmax.f32 %v2401_v0, 0.0  ;;  %v255_v8 = vpop.f32.mrf.mxu0 }
 0x13d   :  { %v2407_v9 = vadd.f32 %v1728_v60, %v254_v6  ;;  %v503_v12 = vpop.f32.mrf.mxu1 }
 0x13e   :  { %2008 = vtanh.f32 %v516_v5  ;;  %v258_v11 = vpop.f32.mrf.mxu0 }
 0x13f   :  { %v517_v14 = vmax.f32 %v2407_v9, 0.0  ;;  %v259_v15 = vadd.f32 %v2398_v58, %v258_v11 }
 0x140   :  { %v260_v17 = vpop.f32.mrf.mxu0 }
 0x141   :  { %2010 = vtanh.f32 %v517_v14  ;;  %v2413_v18 = vadd.f32 %v503_v12, %v259_v15 }
 0x142   :  { %v263_v19 = vpop.f32.mrf.mxu0 }
 0x143   :  { %v518_v20 = vmax.f32 %v2413_v18, 0.0  ;;  %v264_v22 = vadd.f32 %v2398_v58, %v263_v19 }
 0x144   :  { %v265_v23 = vpop.f32.mrf.mxu0 }
 0x145   :  { %2012 = vtanh.f32 %v518_v20  ;;  %v2419_v25 = vadd.f32 %v1731_v3, %v264_v22  ;;  %v522_v9 = vmul.f32 0.2, %v518_v20 }
 0x147   :  { %v519_v26 = vmax.f32 %v2419_v25, 0.0 }
 0x149   :  { %2014 = vtanh.f32 %v519_v26 }
 0x14b   :  { %v2009_v28 = vpop.eup %2008 }
 0x14c   :  { %540 = vst [vmem:[#allocation10] sm:$0xff] %v2009_v28  ;;  %1764 = vmatprep.mubr.f32.mxu1 %v2009_v28 }
 0x14e   :  { %v2011_v29 = vpop.eup %2010 }
 0x14f   :  { %541 = vst [vmem:[#allocation10 + $0x8] sm:$0xff] %v2011_v29  ;;  %1765 = vmatmul.mubr.f32.vlgmr.msra.gmra.mxu1 %v2011_v29 }
 0x150   :  { %1809 = vmatpush3.xpose.msra.mxu1 %v2266_v1  ;;  %v2453_v1 = vpop.f32.mrf.mxu0 }
 0x151   :  { %1810 = vmatprep.subr.mxu1 %v2269_v4 }
 0x152   :  { %v2013_v31 = vpop.eup %2012 }
 0x153   :  { %542 = vst [vmem:[#allocation10 + $0x10] sm:$0xff] %v2013_v31  ;;  %1767 = vmatprep.mubr.f32.mxu1 %v2013_v31 }
 0x154   :  { %1811 = vmatpush3.xpose.msra.mxu1 %v2269_v4  ;;  %v270_v4 = vpop.f32.mrf.mxu0 }
 0x155   :  { %1812 = vmatprep.subr.mxu1 %v2273_v7 }
 0x156   :  { %v2015_v32 = vpop.eup %2014 }
 0x157   :  { %543 = vst [vmem:[#allocation10 + $0x18] sm:$0xff] %v2015_v32  ;;  %1768 = vmatmul.mubr.f32.gmra.mxu1 %v2015_v32 }
 0x158   :  { %1813 = vmatpush3.xpose.msra.mxu1 %v2273_v7  ;;  %v2457_v7 = vpop.f32.mrf.mxu0 }
 0x159   :  { %1814 = vmatprep.subr.mxu1 %v2277_v10 }
 0x15c   :  { %1815 = vmatpush3.xpose.msra.mxu1 %v2277_v10  ;;  %v275_v10 = vpop.f32.mrf.mxu0 }
 0x15d   :  { %1816 = vmatprep.subr.mxu1 %v2281_v13  ;;  %v521_v10 = vmul.f32 0.2, %v517_v14 }
 0x160   :  { %1817 = vmatpush3.xpose.msra.mxu1 %v2281_v13  ;;  %v2459_v13 = vpop.f32.mrf.mxu0 }
 0x161   :  { %1818 = vmatprep.subr.mxu1 %v2285_v16 }
 0x164   :  { %1819 = vmatpush3.xpose.msra.mxu1 %v2285_v16  ;;  %v134_v16 = vld [vmem:[#allocation2 + $0x1b8] sm:$0xff] }
 0x165   :  { %1820 = vmatprep.subr.mxu1 %v2289_v21  ;;  %381 = vmatprep.mubr.f32.mxu0 %v134_v16  ;;  %v520_v16 = vmul.f32 0.2, %v516_v5 }
 0x168   :  { %1821 = vmatpush3.xpose.msra.mxu1 %v2289_v21  ;;  %v133_v21 = vld [vmem:[#allocation2 + $0x1b0] sm:$0xff] }
 0x169   :  { %1822 = vmatprep.subr.mxu1 %v2293_v24  ;;  %382 = vmatmul.mubr.f32.gmra.mxu0 %v133_v21  ;;  %v274_v21 = vadd.f32 %v2398_v58, %v2457_v7 }
 0x16c   :  { %1823 = vmatpush3.xpose.msra.mxu1 %v2293_v24  ;;  %v280_v24 = vpop.f32.mrf.mxu0 }
 0x16d   :  { %1824 = vmatprep.subr.mxu1 %v2297_v27  ;;  %v529_v24 = vmul.f32 0.1, %v521_v10 }
 0x170   :  { %1825 = vmatpush3.xpose.msra.mxu1 %v2297_v27  ;;  %v2461_v27 = vpop.f32.mrf.mxu0 }
 0x171   :  { %1826 = vmatprep.subr.mxu1 %v2301_v30  ;;  %v284_v25 = vadd.f32 %v2398_v58, %v2461_v27 }
 0x174   :  { %1827 = vmatpush3.xpose.msra.mxu1 %v2301_v30  ;;  %v136_v30 = vld [vmem:[#allocation2 + $0x1c8] sm:$0xff] }
 0x175   :  { %1828 = vmatprep.subr.mxu1 %v2305_v33  ;;  %386 = vmatprep.mubr.f32.mxu0 %v136_v30  ;;  %v528_v30 = vmul.f32 0.1, %v520_v16 }
 0x177   :  { %v532_v5 = vsub.f32 %v520_v16, %v528_v30 }
 0x178   :  { %1829 = vmatpush3.xpose.msra.mxu1 %v2305_v33  ;;  %v135_v33 = vld [vmem:[#allocation2 + $0x1c0] sm:$0xff] }
 0x179   :  { %1830 = vmatprep.subr.mxu1 %v2309_v36  ;;  %387 = vmatmul.mubr.f32.gmra.mxu0 %v135_v33  ;;  %v523_v33 = vmul.f32 0.2, %v519_v26  ;;  %v530_v26 = vmul.f32 0.1, %v522_v9 }
 0x17c   :  { %1831 = vmatpush3.xpose.msra.mxu1 %v2309_v36  ;;  %v285_v36 = vpop.f32.mrf.mxu0 }
 0x17d   :  { %1832 = vmatprep.subr.mxu1 %v2313_v39 }
 0x17e   :  { %v2463_v37 = vpop.f32.mrf.mxu0 }
 0x180   :  { %1833 = vmatpush3.xpose.msra.mxu1 %v2313_v39  ;;  %v138_v39 = vld [vmem:[#allocation2 + $0x1d8] sm:$0xff]  ;;  %v290_v38 = vpop.f32.mrf.mxu0 }
 0x181   :  { %1834 = vmatprep.subr.mxu1 %v2317_v42  ;;  %391 = vmatprep.mubr.f32.mxu0 %v138_v39  ;;  %v269_v39 = vadd.f32 %v2398_v58, %v2453_v1  ;;  %v279_v1 = vadd.f32 %v2398_v58, %v2459_v13 }
 0x182   :  { %v2465_v40 = vpop.f32.mrf.mxu0 }
 0x184   :  { %1835 = vmatpush3.xpose.msra.mxu1 %v2317_v42  ;;  %v137_v42 = vld [vmem:[#allocation2 + $0x1d0] sm:$0xff]  ;;  %v295_v41 = vpop.f32.mrf.mxu0 }
 0x185   :  { %1836 = vmatprep.subr.mxu1 %v2321_v45  ;;  %392 = vmatmul.mubr.f32.gmra.mxu0 %v137_v42  ;;  %v533_v42 = vsub.f32 %v521_v10, %v529_v24 }
 0x186   :  { %v2467_v43 = vpop.f32.mrf.mxu0 }
 0x188   :  { %1837 = vmatpush3.xpose.msra.mxu1 %v2321_v45  ;;  %v140_v45 = vld [vmem:[#allocation2 + $0x1e8] sm:$0xff]  ;;  %v300_v44 = vpop.f32.mrf.mxu0 }
 0x189   :  { %1838 = vmatprep.subr.mxu1 %v2325_v48  ;;  %396 = vmatprep.mubr.f32.mxu0 %v140_v45 }
 0x18a   :  { %v2469_v46 = vpop.f32.mrf.mxu0 }
 0x18c   :  { %1839 = vmatpush3.xpose.msra.mxu1 %v2325_v48  ;;  %v139_v48 = vld [vmem:[#allocation2 + $0x1e0] sm:$0xff]  ;;  %v305_v47 = vpop.f32.mrf.mxu0 }
 0x18d   :  { %397 = vmatmul.mubr.f32.gmra.mxu0 %v139_v48 }
 0x18e   :  { %401 = vmatprep.mubr.f32.mxu0 %v142_v34  ;;  %v2471_v49 = vpop.f32.mrf.mxu0  ;;  %v531_v34 = vmul.f32 0.1, %v523_v33 }
 0x190   :  { %v310_v50 = vpop.f32.mrf.mxu0  ;;  %v535_v44 = vsub.f32 %v523_v33, %v531_v34  ;;  %v2555_v34 = vld [vmem:[#allocation8 + $0x50] sm:$0xff] }
 0x191   :  { %402 = vmatmul.mubr.f32.gmra.mxu0 %v141_v35 }
 0x192   :  { %v2473_v51 = vpop.f32.mrf.mxu0 }
 0x194   :  { %v315_v52 = vpop.f32.mrf.mxu0 }
 0x196   :  { %v2475_v53 = vpop.f32.mrf.mxu0 }
 0x198   :  { %v320_v54 = vpop.f32.mrf.mxu0 }
 0x19a   :  { %v2477_v55 = vpop.f32.mrf.mxu0 }
 0x19c   :  { %v325_v56 = vpop.f32.mrf.mxu0 }
 0x19d   :  { %v534_v56 = vsub.f32 %v522_v9, %v530_v26  ;;  %v2537_v9 = vld [vmem:[#allocation8 + $0x70] sm:$0xff] }
 0x19e   :  { %v2479_v57 = vpop.f32.mrf.mxu0  ;;  %v2571_v26 = vld [vmem:[#allocation8 + $0x30] sm:$0xff] }
 0x1a0   :  { %v330_v59 = vpop.f32.mrf.mxu0 }
 0x1a2   :  { %v2481_v60 = vpop.f32.mrf.mxu0 }
 0x1a4   :  { %v335_v61 = vpop.f32.mrf.mxu0 }
 0x1a6   :  { %v2483_v62 = vpop.f32.mrf.mxu0 }
 0x1a8   :  { %v340_v63 = vpop.f32.mrf.mxu0 }
 0x1aa   :  { %v2485_v2 = vpop.f32.mrf.mxu0 }
 0x1ac   :  { %v345_v3 = vpop.f32.mrf.mxu0 }
 0x1ae   :  { %v2487_v6 = vpop.f32.mrf.mxu0 }
 0x1b0   :  { %v350_v8 = vpop.f32.mrf.mxu0 }
 0x1b2   :  { %v2489_v11 = vpop.f32.mrf.mxu0 }
 0x1b4   :  { %v355_v12 = vpop.f32.mrf.mxu0 }
 0x1b6   :  { %v2491_v15 = vpop.f32.mrf.mxu0 }
 0x1b8   :  { %v360_v17 = vpop.f32.mrf.mxu0 }
 0x1ba   :  { %v2493_v19 = vpop.f32.mrf.mxu0 }
 0x1bc   :  { %v365_v22 = vpop.f32.mrf.mxu0 }
 0x1be   :  { %v2495_v23 = vpop.f32.mrf.mxu0 }
 0x1c0   :  { %v370_v28 = vpop.f32.mrf.mxu0 }
 0x1c2   :  { %v2497_v29 = vpop.f32.mrf.mxu0 }
 0x1c4   :  { %v375_v31 = vpop.f32.mrf.mxu0 }
 0x1c6   :  { %v2499_v32 = vpop.f32.mrf.mxu0 }
 0x1c8   :  { %v380_v4 = vpop.f32.mrf.mxu0 }
 0x20f   :  { %v1766_v36 = vpop.f32.mrf.mxu1 }
 0x210   :  { %v646_v45 = vadd.f32 %v1766_v36, %v274_v21 }
 0x211   :  { %v626_v48 = vpop.f32.mrf.mxu1 }
 0x212   :  { %v650_v0 = vsub.f32 %v646_v45, %v533_v42  ;;  %v645_v14 = vadd.f32 %v626_v48, %v269_v39  ;;  %v2535_v48 = vld [vmem:[#allocation8 + $0x78] sm:$0xff] }
 0x213   :  { %1846 = vmatprep.subr.mxu0 %v2535_v48  ;;  %1884 = vmatprep.subr.mxu1 %v2535_v48 }
 0x214   :  { %v654_v7 = vmax.f32 %v650_v0, 0.0  ;;  %v649_v35 = vsub.f32 %v645_v14, %v532_v5  ;;  %v2543_v0 = vld [vmem:[#allocation8 + $0x68] sm:$0xff]  ;;  %v2551_v14 = vld [vmem:[#allocation8 + $0x58] sm:$0xff] }
 0x216   :  { %v658_v38 = vmul.f32 0.2, %v654_v7  ;;  %2016 = vtanh.f32 %v654_v7  ;;  %v653_v41 = vmax.f32 %v649_v35, 0.0  ;;  %v2559_v7 = vld [vmem:[#allocation8 + $0x48] sm:$0xff]  ;;  %v2563_v35 = vld [vmem:[#allocation8 + $0x40] sm:$0xff] }
 0x217   :  { %v1769_v47 = vpop.f32.mrf.mxu1 }
 0x218   :  { %v657_v18 = vmul.f32 0.2, %v653_v41  ;;  %2018 = vtanh.f32 %v653_v41  ;;  %v648_v20 = vadd.f32 %v1769_v47, %v284_v25  ;;  %v2517_v50 = vadd.f32 %v658_v38, %v533_v42  ;;  %v2567_v25 = vld [vmem:[#allocation8 + $0x38] sm:$0xff] }
 0x219   :  { %v636_v52 = vpop.f32.mrf.mxu1  ;;  %v294_v41 = vadd.f32 %v2398_v58, %v2465_v40  ;;  %v289_v47 = vadd.f32 %v2398_v58, %v2463_v37  ;;  %v304_v40 = vadd.f32 %v2398_v58, %v2469_v46 }
 0x21a   :  { %v652_v54 = vsub.f32 %v648_v20, %v535_v44  ;;  %v647_v59 = vadd.f32 %v636_v52, %v279_v1  ;;  %v2519_v61 = vadd.f32 %v657_v18, %v532_v5  ;;  %v2547_v5 = vld [vmem:[#allocation8 + $0x60] sm:$0xff]  ;;  %v666_v38 = vmul.f32 0.1, %v2517_v50 }
 0x21c   :  { %v656_v27 = vmax.f32 %v652_v54, 0.0  ;;  %v651_v63 = vsub.f32 %v647_v59, %v534_v56  ;;  %v665_v1 = vmul.f32 0.1, %v2519_v61  ;;  %v670_v18 = vsub.f32 %v2517_v50, %v666_v38 }
 0x21d   :  { %v299_v50 = vadd.f32 %v2398_v58, %v2467_v43 }
 0x21e   :  { %v660_v3 = vmul.f32 0.2, %v656_v27  ;;  %2020 = vtanh.f32 %v656_v27  ;;  %v655_v8 = vmax.f32 %v651_v63, 0.0 }
 0x220   :  { %v659_v12 = vmul.f32 0.2, %v655_v8  ;;  %2022 = vtanh.f32 %v655_v8  ;;  %v2521_v13 = vadd.f32 %v660_v3, %v535_v44 }
 0x222   :  { %v2523_v17 = vadd.f32 %v659_v12, %v534_v56  ;;  %v669_v56 = vsub.f32 %v2519_v61, %v665_v1  ;;  %v668_v27 = vmul.f32 0.1, %v2521_v13 }
 0x223   :  { %v2017_v22 = vpop.eup %2016 }
 0x224   :  { %679 = vst [vmem:[#allocation10 + $0x28] sm:$0xff] %v2017_v22  ;;  %v667_v37 = vmul.f32 0.1, %v2523_v17 }
 0x225   :  { %v2019_v28 = vpop.eup %2018 }
 0x226   :  { %678 = vst [vmem:[#allocation10 + $0x20] sm:$0xff] %v2019_v28  ;;  %1802 = vmatprep.mubr.f32.mxu0 %v2019_v28  ;;  %v671_v46 = vsub.f32 %v2523_v17, %v667_v37  ;;  %v309_v37 = vadd.f32 %v2398_v58, %v2471_v49 }
 0x227   :  { %1803 = vmatmul.mubr.f32.vlgmr.msra.gmra.mxu0 %v2017_v22  ;;  %v672_v22 = vsub.f32 %v2521_v13, %v668_v27  ;;  %v2643_v27 = vld [vmem:[#allocation8 + $0x8] sm:$0xff] }
 0x228   :  { %1847 = vmatpush3.xpose.msra.mxu0 %v2535_v48 }
 0x229   :  { %v2525_v10 = vpop.f32.mrf.mxu0  ;;  %1848 = vmatprep.subr.mxu0 %v2537_v9 }
 0x22b   :  { %v2021_v31 = vpop.eup %2020  ;;  %v385_v16 = vpop.f32.mrf.mxu0 }
 0x22c   :  { %681 = vst [vmem:[#allocation10 + $0x38] sm:$0xff] %v2021_v31  ;;  %1849 = vmatpush3.xpose.msra.mxu0 %v2537_v9 }
 0x22d   :  { %v2023_v4 = vpop.eup %2022  ;;  %1850 = vmatprep.subr.mxu0 %v2543_v0 }
 0x22e   :  { %680 = vst [vmem:[#allocation10 + $0x30] sm:$0xff] %v2023_v4  ;;  %1805 = vmatprep.mubr.f32.mxu0 %v2023_v4 }
 0x22f   :  { %1806 = vmatmul.mubr.f32.gmra.mxu0 %v2021_v31 }
 0x230   :  { %1851 = vmatpush3.xpose.msra.mxu0 %v2543_v0 }
 0x231   :  { %1852 = vmatprep.subr.mxu0 %v2547_v5 }
 0x234   :  { %1853 = vmatpush3.xpose.msra.mxu0 %v2547_v5 }
 0x235   :  { %1854 = vmatprep.subr.mxu0 %v2551_v14 }
 0x238   :  { %1855 = vmatpush3.xpose.msra.mxu0 %v2551_v14 }
 0x239   :  { %v2527_v21 = vpop.f32.mrf.mxu0  ;;  %1856 = vmatprep.subr.mxu0 %v2555_v34 }
 0x23b   :  { %v390_v24 = vpop.f32.mrf.mxu0 }
 0x23c   :  { %1857 = vmatpush3.xpose.msra.mxu0 %v2555_v34 }
 0x23d   :  { %1858 = vmatprep.subr.mxu0 %v2559_v7 }
 0x240   :  { %1859 = vmatpush3.xpose.msra.mxu0 %v2559_v7 }
 0x241   :  { %1860 = vmatprep.subr.mxu0 %v2563_v35 }
 0x244   :  { %1861 = vmatpush3.xpose.msra.mxu0 %v2563_v35 }
 0x245   :  { %v2529_v30 = vpop.f32.mrf.mxu0  ;;  %1862 = vmatprep.subr.mxu0 %v2567_v25 }
 0x247   :  { %v395_v33 = vpop.f32.mrf.mxu0 }
 0x248   :  { %1863 = vmatpush3.xpose.msra.mxu0 %v2567_v25 }
 0x249   :  { %1864 = vmatprep.subr.mxu0 %v2571_v26 }
 0x24c   :  { %1865 = vmatpush3.xpose.msra.mxu0 %v2571_v26 }
 0x24d   :  { %v2531_v36 = vpop.f32.mrf.mxu0 }
 0x24f   :  { %v400_v39 = vpop.f32.mrf.mxu0 }
 0x251   :  { %v2533_v42 = vpop.f32.mrf.mxu0 }
 0x253   :  { %v405_v45 = vpop.f32.mrf.mxu0 }
 0x2e7   :  { %v1804_v44 = vpop.f32.mrf.mxu0 }
 0x2e8   :  { %v784_v20 = vadd.f32 %v1804_v44, %v294_v41 }
 0x2e9   :  { %v764_v52 = vpop.f32.mrf.mxu0 }
 0x2ea   :  { %v788_v54 = vsub.f32 %v784_v20, %v670_v18  ;;  %v783_v59 = vadd.f32 %v764_v52, %v289_v47  ;;  %v2619_v52 = vld [vmem:[#allocation8 + $0x28] sm:$0xff] }
 0x2eb   :  { %1866 = vmatprep.subr.mxu0 %v2619_v52 }
 0x2ec   :  { %v792_v63 = vmax.f32 %v788_v54, 0.0  ;;  %v787_v3 = vsub.f32 %v783_v59, %v669_v56  ;;  %1867 = vmatpush3.xpose.msra.mxu0 %v2619_v52  ;;  %v2625_v54 = vld [vmem:[#allocation8 + $0x20] sm:$0xff]  ;;  %v2637_v59 = vld [vmem:[#allocation8 + $0x10] sm:$0xff] }
 0x2ed   :  { %1868 = vmatprep.subr.mxu0 %v2625_v54 }
 0x2ee   :  { %v796_v8 = vmul.f32 0.2, %v792_v63  ;;  %2024 = vtanh.f32 %v792_v63  ;;  %v791_v12 = vmax.f32 %v787_v3, 0.0  ;;  %v2649_v63 = vld [vmem:[#allocation8] sm:$0xff] }
 0x2ef   :  { %v1807_v28 = vpop.f32.mrf.mxu0 }
 0x2f0   :  { %v795_v61 = vmul.f32 0.2, %v791_v12  ;;  %2026 = vtanh.f32 %v791_v12  ;;  %v786_v31 = vadd.f32 %v1807_v28, %v304_v40  ;;  %v2591_v4 = vadd.f32 %v796_v8, %v670_v18  ;;  %1869 = vmatpush3.xpose.msra.mxu0 %v2625_v54 }
 0x2f1   :  { %v774_v16 = vpop.f32.mrf.mxu0  ;;  %v314_v40 = vadd.f32 %v2398_v58, %v2473_v51  ;;  %v324_v51 = vadd.f32 %v2398_v58, %v2477_v55 }
 0x2f2   :  { %v790_v24 = vsub.f32 %v786_v31, %v672_v22  ;;  %v785_v33 = vadd.f32 %v774_v16, %v299_v50  ;;  %v2594_v39 = vadd.f32 %v795_v61, %v669_v56  ;;  %v2631_v56 = vld [vmem:[#allocation8 + $0x18] sm:$0xff]  ;;  %v804_v3 = vmul.f32 0.1, %v2591_v4 }
 0x2f3   :  { %1870 = vmatprep.subr.mxu0 %v2631_v56 }
 0x2f4   :  { %v794_v45 = vmax.f32 %v790_v24, 0.0  ;;  %v789_v38 = vsub.f32 %v785_v33, %v671_v46  ;;  %1871 = vmatpush3.xpose.msra.mxu0 %v2631_v56  ;;  %v803_v8 = vmul.f32 0.1, %v2594_v39  ;;  %v808_v50 = vsub.f32 %v2591_v4, %v804_v3 }
 0x2f5   :  { %1872 = vmatprep.subr.mxu0 %v2637_v59  ;;  %v319_v4 = vadd.f32 %v2398_v58, %v2475_v53 }
 0x2f6   :  { %v798_v41 = vmul.f32 0.2, %v794_v45  ;;  %2028 = vtanh.f32 %v794_v45  ;;  %v793_v43 = vmax.f32 %v789_v38, 0.0  ;;  %v807_v31 = vsub.f32 %v2594_v39, %v803_v8 }
 0x2f8   :  { %v797_v1 = vmul.f32 0.2, %v793_v43  ;;  %2030 = vtanh.f32 %v793_v43  ;;  %v2596_v13 = vadd.f32 %v798_v41, %v672_v22  ;;  %1873 = vmatpush3.xpose.msra.mxu0 %v2637_v59 }
 0x2f9   :  { %1874 = vmatprep.subr.mxu0 %v2643_v27 }
 0x2fa   :  { %v2598_v44 = vadd.f32 %v797_v1, %v671_v46  ;;  %v806_v24 = vmul.f32 0.1, %v2596_v13 }
 0x2fb   :  { %v2025_v47 = vpop.eup %2024 }
 0x2fc   :  { %817 = vst [vmem:[#allocation10 + $0x48] sm:$0xff] %v2025_v47  ;;  %1875 = vmatpush3.xpose.msra.mxu0 %v2643_v27  ;;  %v805_v49 = vmul.f32 0.1, %v2598_v44  ;;  %v810_v41 = vsub.f32 %v2596_v13, %v806_v24 }
 0x2fd   :  { %v2027_v18 = vpop.eup %2026  ;;  %1876 = vmatprep.subr.mxu0 %v2649_v63 }
 0x2fe   :  { %816 = vst [vmem:[#allocation10 + $0x40] sm:$0xff] %v2027_v18  ;;  %1840 = vmatprep.mubr.f32.mxu1 %v2027_v18  ;;  %v809_v55 = vsub.f32 %v2598_v44, %v805_v49 }
 0x2ff   :  { %1841 = vmatmul.mubr.f32.vlgmr.msra.gmra.mxu1 %v2025_v47 }
 0x300   :  { %1885 = vmatpush3.xpose.msra.mxu1 %v2535_v48  ;;  %1877 = vmatpush3.xpose.msra.mxu0 %v2649_v63 }
 0x301   :  { %1886 = vmatprep.subr.mxu1 %v2537_v9  ;;  %1922 = vmatprep.subr.mxu0 %v2535_v48 }
 0x303   :  { %v2029_v17 = vpop.eup %2028 }
 0x304   :  { %819 = vst [vmem:[#allocation10 + $0x58] sm:$0xff] %v2029_v17  ;;  %1887 = vmatpush3.xpose.msra.mxu1 %v2537_v9 }
 0x305   :  { %v2031_v20 = vpop.eup %2030  ;;  %1888 = vmatprep.subr.mxu1 %v2543_v0 }
 0x306   :  { %818 = vst [vmem:[#allocation10 + $0x50] sm:$0xff] %v2031_v20  ;;  %1843 = vmatprep.mubr.f32.mxu1 %v2031_v20 }
 0x307   :  { %1844 = vmatmul.mubr.f32.gmra.mxu1 %v2029_v17 }
 0x308   :  { %1889 = vmatpush3.xpose.msra.mxu1 %v2543_v0 }
 0x309   :  { %1890 = vmatprep.subr.mxu1 %v2547_v5 }
 0x30c   :  { %1891 = vmatpush3.xpose.msra.mxu1 %v2547_v5 }
 0x30d   :  { %1892 = vmatprep.subr.mxu1 %v2551_v14 }
 0x310   :  { %1893 = vmatpush3.xpose.msra.mxu1 %v2551_v14 }
 0x311   :  { %1894 = vmatprep.subr.mxu1 %v2555_v34 }
 0x314   :  { %1895 = vmatpush3.xpose.msra.mxu1 %v2555_v34 }
 0x315   :  { %1896 = vmatprep.subr.mxu1 %v2559_v7 }
 0x318   :  { %1897 = vmatpush3.xpose.msra.mxu1 %v2559_v7 }
 0x319   :  { %1898 = vmatprep.subr.mxu1 %v2563_v35 }
 0x31c   :  { %1899 = vmatpush3.xpose.msra.mxu1 %v2563_v35 }
 0x31d   :  { %1900 = vmatprep.subr.mxu1 %v2567_v25 }
 0x320   :  { %1901 = vmatpush3.xpose.msra.mxu1 %v2567_v25 }
 0x321   :  { %1902 = vmatprep.subr.mxu1 %v2571_v26 }
 0x324   :  { %1903 = vmatpush3.xpose.msra.mxu1 %v2571_v26 }
 0x325   :  { %1904 = vmatprep.subr.mxu1 %v2619_v52 }
 0x328   :  { %1905 = vmatpush3.xpose.msra.mxu1 %v2619_v52 }
 0x329   :  { %1906 = vmatprep.subr.mxu1 %v2625_v54 }
 0x32c   :  { %1907 = vmatpush3.xpose.msra.mxu1 %v2625_v54 }
 0x32d   :  { %1908 = vmatprep.subr.mxu1 %v2631_v56 }
 0x330   :  { %1909 = vmatpush3.xpose.msra.mxu1 %v2631_v56 }
 0x331   :  { %1910 = vmatprep.subr.mxu1 %v2637_v59 }
 0x334   :  { %1911 = vmatpush3.xpose.msra.mxu1 %v2637_v59 }
 0x335   :  { %1912 = vmatprep.subr.mxu1 %v2643_v27 }
 0x338   :  { %1913 = vmatpush3.xpose.msra.mxu1 %v2643_v27 }
 0x339   :  { %1914 = vmatprep.subr.mxu1 %v2649_v63 }
 0x33c   :  { %1915 = vmatpush3.xpose.msra.mxu1 %v2649_v63 }
 0x33d   :  { %1960 = vmatprep.subr.mxu1 %v2535_v48 }
 0x3bf   :  { %v1842_v12 = vpop.f32.mrf.mxu1 }
 0x3c0   :  { %v922_v22 = vadd.f32 %v1842_v12, %v314_v40 }
 0x3c1   :  { %v902_v28 = vpop.f32.mrf.mxu1 }
 0x3c2   :  { %v926_v61 = vsub.f32 %v922_v22, %v808_v50  ;;  %v921_v16 = vadd.f32 %v902_v28, %v309_v37 }
 0x3c4   :  { %v930_v46 = vmax.f32 %v926_v61, 0.0  ;;  %v925_v33 = vsub.f32 %v921_v16, %v807_v31  ;;  %v334_v16 = vadd.f32 %v2398_v58, %v2481_v60 }
 0x3c6   :  { %v934_v45 = vmul.f32 0.2, %v930_v46  ;;  %2032 = vtanh.f32 %v930_v46  ;;  %v929_v38 = vmax.f32 %v925_v33, 0.0  ;;  %v329_v33 = vadd.f32 %v2398_v58, %v2479_v57 }
 0x3c7   :  { %v1845_v43 = vpop.f32.mrf.mxu1  ;;  %v339_v57 = vadd.f32 %v2398_v58, %v2483_v62 }
 0x3c8   :  { %v933_v39 = vmul.f32 0.2, %v929_v38  ;;  %2034 = vtanh.f32 %v929_v38  ;;  %v924_v1 = vadd.f32 %v1845_v43, %v324_v51  ;;  %v2672_v47 = vadd.f32 %v934_v45, %v808_v50 }
 0x3c9   :  { %v912_v18 = vpop.f32.mrf.mxu1 }
 0x3ca   :  { %v928_v17 = vsub.f32 %v924_v1, %v810_v41  ;;  %v923_v20 = vadd.f32 %v912_v18, %v319_v4  ;;  %v937_v3 = vadd.f32 %v933_v39, %v807_v31  ;;  %v942_v31 = vmul.f32 0.1, %v2672_v47 }
 0x3cb   :  { %v344_v18 = vadd.f32 %v2398_v58, %v2485_v2 }
 0x3cc   :  { %v932_v40 = vmax.f32 %v928_v17, 0.0  ;;  %v927_v8 = vsub.f32 %v923_v20, %v809_v55  ;;  %v941_v24 = vmul.f32 0.1, %v937_v3  ;;  %v946_v51 = vsub.f32 %v2672_v47, %v942_v31 }
 0x3ce   :  { %v936_v12 = vmul.f32 0.2, %v932_v40  ;;  %2036 = vtanh.f32 %v932_v40  ;;  %v931_v37 = vmax.f32 %v927_v8, 0.0  ;;  %v945_v4 = vsub.f32 %v937_v3, %v941_v24 }
 0x3d0   :  { %v935_v53 = vmul.f32 0.2, %v931_v37  ;;  %2038 = vtanh.f32 %v931_v37  ;;  %v2675_v13 = vadd.f32 %v936_v12, %v810_v41 }
 0x3d2   :  { %v2677_v22 = vadd.f32 %v935_v53, %v809_v55  ;;  %v944_v43 = vmul.f32 0.1, %v2675_v13 }
 0x3d3   :  { %v2033_v28 = vpop.eup %2032 }
 0x3d4   :  { %955 = vst [vmem:[#allocation10 + $0x68] sm:$0xff] %v2033_v28  ;;  %v943_v55 = vmul.f32 0.1, %v2677_v22  ;;  %v948_v47 = vsub.f32 %v2675_v13, %v944_v43 }
 0x3d5   :  { %v2035_v50 = vpop.eup %2034 }
 0x3d6   :  { %954 = vst [vmem:[#allocation10 + $0x60] sm:$0xff] %v2035_v50  ;;  %1878 = vmatprep.mubr.f32.mxu0 %v2035_v50  ;;  %v947_v2 = vsub.f32 %v2677_v22, %v943_v55 }
 0x3d7   :  { %1879 = vmatmul.mubr.f32.vlgmr.msra.gmra.mxu0 %v2033_v28 }
 0x3d8   :  { %1923 = vmatpush3.xpose.msra.mxu0 %v2535_v48 }
 0x3d9   :  { %1924 = vmatprep.subr.mxu0 %v2537_v9 }
 0x3db   :  { %v2037_v44 = vpop.eup %2036 }
 0x3dc   :  { %957 = vst [vmem:[#allocation10 + $0x78] sm:$0xff] %v2037_v44  ;;  %1925 = vmatpush3.xpose.msra.mxu0 %v2537_v9 }
 0x3dd   :  { %v2039_v61 = vpop.eup %2038  ;;  %1926 = vmatprep.subr.mxu0 %v2543_v0 }
 0x3de   :  { %956 = vst [vmem:[#allocation10 + $0x70] sm:$0xff] %v2039_v61  ;;  %1881 = vmatprep.mubr.f32.mxu0 %v2039_v61 }
 0x3df   :  { %1882 = vmatmul.mubr.f32.gmra.mxu0 %v2037_v44 }
 0x3e0   :  { %1927 = vmatpush3.xpose.msra.mxu0 %v2543_v0 }
 0x3e1   :  { %1928 = vmatprep.subr.mxu0 %v2547_v5 }
 0x3e4   :  { %1929 = vmatpush3.xpose.msra.mxu0 %v2547_v5 }
 0x3e5   :  { %1930 = vmatprep.subr.mxu0 %v2551_v14 }
 0x3e8   :  { %1931 = vmatpush3.xpose.msra.mxu0 %v2551_v14 }
 0x3e9   :  { %1932 = vmatprep.subr.mxu0 %v2555_v34 }
 0x3ec   :  { %1933 = vmatpush3.xpose.msra.mxu0 %v2555_v34 }
 0x3ed   :  { %1934 = vmatprep.subr.mxu0 %v2559_v7 }
 0x3f0   :  { %1935 = vmatpush3.xpose.msra.mxu0 %v2559_v7 }
 0x3f1   :  { %1936 = vmatprep.subr.mxu0 %v2563_v35 }
 0x3f4   :  { %1937 = vmatpush3.xpose.msra.mxu0 %v2563_v35 }
 0x3f5   :  { %1938 = vmatprep.subr.mxu0 %v2567_v25 }
 0x3f8   :  { %1939 = vmatpush3.xpose.msra.mxu0 %v2567_v25 }
 0x3f9   :  { %1940 = vmatprep.subr.mxu0 %v2571_v26 }
 0x3fc   :  { %1941 = vmatpush3.xpose.msra.mxu0 %v2571_v26 }
 0x3fd   :  { %1942 = vmatprep.subr.mxu0 %v2619_v52 }
 0x400   :  { %1943 = vmatpush3.xpose.msra.mxu0 %v2619_v52 }
 0x401   :  { %1944 = vmatprep.subr.mxu0 %v2625_v54 }
 0x404   :  { %1945 = vmatpush3.xpose.msra.mxu0 %v2625_v54 }
 0x405   :  { %1946 = vmatprep.subr.mxu0 %v2631_v56 }
 0x408   :  { %1947 = vmatpush3.xpose.msra.mxu0 %v2631_v56 }
 0x409   :  { %1948 = vmatprep.subr.mxu0 %v2637_v59 }
 0x40c   :  { %1949 = vmatpush3.xpose.msra.mxu0 %v2637_v59 }
 0x40d   :  { %1950 = vmatprep.subr.mxu0 %v2643_v27 }
 0x410   :  { %1951 = vmatpush3.xpose.msra.mxu0 %v2643_v27 }
 0x411   :  { %1952 = vmatprep.subr.mxu0 %v2649_v63 }
 0x414   :  { %1953 = vmatpush3.xpose.msra.mxu0 %v2649_v63 }
 0x497   :  { %v1880_v46 = vpop.f32.mrf.mxu0 }
 0x498   :  { %v1060_v45 = vadd.f32 %v1880_v46, %v334_v16 }
 0x499   :  { %v1040_v38 = vpop.f32.mrf.mxu0 }
 0x49a   :  { %v1064_v49 = vsub.f32 %v1060_v45, %v946_v51  ;;  %v1059_v41 = vadd.f32 %v1040_v38, %v329_v33 }
 0x49c   :  { %v1068_v39 = vmax.f32 %v1064_v49, 0.0  ;;  %v1063_v1 = vsub.f32 %v1059_v41, %v945_v4 }
 0x49e   :  { %v1072_v60 = vmul.f32 0.2, %v1068_v39  ;;  %2040 = vtanh.f32 %v1068_v39  ;;  %v1067_v17 = vmax.f32 %v1063_v1, 0.0 }
 0x49f   :  { %v1883_v20 = vpop.f32.mrf.mxu0 }
 0x4a0   :  { %v1071_v3 = vmul.f32 0.2, %v1067_v17  ;;  %2042 = vtanh.f32 %v1067_v17  ;;  %v1062_v40 = vadd.f32 %v1883_v20, %v344_v18  ;;  %v2723_v8 = vadd.f32 %v1072_v60, %v946_v51 }
 0x4a1   :  { %v1050_v12 = vpop.f32.mrf.mxu0 }
 0x4a2   :  { %v1066_v37 = vsub.f32 %v1062_v40, %v948_v47  ;;  %v1061_v53 = vadd.f32 %v1050_v12, %v339_v57  ;;  %v1075_v28 = vadd.f32 %v1071_v3, %v945_v4 }
 0x4a4   :  { %v1070_v50 = vmax.f32 %v1066_v37, 0.0  ;;  %v1065_v44 = vsub.f32 %v1061_v53, %v947_v2 }
 0x4a6   :  { %v1074_v61 = vmul.f32 0.2, %v1070_v50  ;;  %2044 = vtanh.f32 %v1070_v50  ;;  %v1069_v31 = vmax.f32 %v1065_v44, 0.0 }
 0x4a8   :  { %v1073_v62 = vmul.f32 0.2, %v1069_v31  ;;  %2046 = vtanh.f32 %v1069_v31  ;;  %v2726_v13 = vadd.f32 %v1074_v61, %v948_v47 }
 0x4aa   :  { %v2728_v16 = vadd.f32 %v1073_v62, %v947_v2 }
 0x4ab   :  { %v2041_v24 = vpop.eup %2040 }
 0x4ac   :  { %1093 = vst [vmem:[#allocation10 + $0x88] sm:$0xff] %v2041_v24 }
 0x4ad   :  { %v2043_v46 = vpop.eup %2042 }
 0x4ae   :  { %1092 = vst [vmem:[#allocation10 + $0x80] sm:$0xff] %v2043_v46  ;;  %1916 = vmatprep.mubr.f32.mxu1 %v2043_v46 }
 0x4af   :  { %1917 = vmatmul.mubr.f32.vlgmr.msra.gmra.mxu1 %v2041_v24 }
 0x4b0   :  { %1961 = vmatpush3.xpose.msra.mxu1 %v2535_v48  ;;  %v1080_v48 = vmul.f32 0.1, %v2723_v8 }
 0x4b1   :  { %1962 = vmatprep.subr.mxu1 %v2537_v9 }
 0x4b3   :  { %v2045_v22 = vpop.eup %2044 }
 0x4b4   :  { %1095 = vst [vmem:[#allocation10 + $0x98] sm:$0xff] %v2045_v22  ;;  %1963 = vmatpush3.xpose.msra.mxu1 %v2537_v9  ;;  %v354_v9 = vadd.f32 %v2398_v58, %v2489_v11  ;;  %v2771_v11 = vld [vmem:[%s2812_s4] ss:$0 sm:$0xff]  ;;  %s2211_s4 = smov [#allocation10]  }
 0x4b5   :  { %v2047_v33 = vpop.eup %2046  ;;  %1964 = vmatprep.subr.mxu1 %v2543_v0  ;;  %v359_v51 = vadd.f32 %v2771_v11, %v2491_v15  ;;  %v374_v2 = vadd.f32 %v2771_v11, %v2497_v29  ;;  %v369_v50 = vadd.f32 %v2771_v11, %v2495_v23  ;;  %s1503_s21 = sshll.u32 %s2211_s4, 4  ;;  %s1504_s21 = int_to_ptr.vmem [resolvable:$true] %s1503_s21 }
 0x4b6   :  { %1094 = vst [vmem:[#allocation10 + $0x90] sm:$0xff] %v2047_v33  ;;  %1919 = vmatprep.mubr.f32.mxu1 %v2047_v33  ;;  %v384_v33 = vadd.f32 %v2771_v11, %v2525_v10  ;;  %s2153_s26 = scalar_lea.vmem %s1504_s21, 4096  ;;  %p2158_p7 = scmp.lt.s32.totalorder %s1504_s21, %s1504_s21 }
 0x4b7   :  { %1920 = vmatmul.mubr.f32.gmra.mxu1 %v2045_v22  ;;  %p2154_p6 = scmp.ne.s32.totalorder %s1504_s21, %s2153_s26  ;;  %p2159_p8 = scmp.lt.s32.totalorder %s2153_s26, %s2153_s26 }
 0x4b8   :  { %1965 = vmatpush3.xpose.msra.mxu1 %v2543_v0  ;;  %v1079_v0 = vmul.f32 0.1, %v1075_v28 }
 0x4b9   :  { %1966 = vmatprep.subr.mxu1 %v2547_v5  ;;  %p2160_p9 = por %p2159_p8, %p2158_p7 }
 0x4bb   :  { %p2161_p10 = pnand %p2160_p9, %p2154_p6 }
 0x4bc   :  { %1967 = vmatpush3.xpose.msra.mxu1 %v2547_v5 }
 0x4bd   :  { %1968 = vmatprep.subr.mxu1 %v2551_v14 }
 0x4c0   :  { %1969 = vmatpush3.xpose.msra.mxu1 %v2551_v14  ;;  %v349_v14 = vadd.f32 %v2398_v58, %v2487_v6 }
 0x4c1   :  { %1970 = vmatprep.subr.mxu1 %v2555_v34 }
 0x4c4   :  { %1971 = vmatpush3.xpose.msra.mxu1 %v2555_v34  ;;  %v1084_v34 = vsub.f32 %v2723_v8, %v1080_v48 }
 0x4c5   :  { %1972 = vmatprep.subr.mxu1 %v2559_v7 }
 0x4c8   :  { %1973 = vmatpush3.xpose.msra.mxu1 %v2559_v7 }
 0x4c9   :  { %1974 = vmatprep.subr.mxu1 %v2563_v35 }
 0x4cc   :  { %1975 = vmatpush3.xpose.msra.mxu1 %v2563_v35 }
 0x4cd   :  { %1976 = vmatprep.subr.mxu1 %v2567_v25 }
 0x4d0   :  { %1977 = vmatpush3.xpose.msra.mxu1 %v2567_v25 }
 0x4d1   :  { %1978 = vmatprep.subr.mxu1 %v2571_v26 }
 0x4d4   :  { %1979 = vmatpush3.xpose.msra.mxu1 %v2571_v26  ;;  %v1083_v26 = vsub.f32 %v1075_v28, %v1079_v0  ;;  %v379_v0 = vadd.f32 %v2771_v11, %v2499_v32 }
 0x4d5   :  { %1980 = vmatprep.subr.mxu1 %v2619_v52 }
 0x4d8   :  { %1981 = vmatpush3.xpose.msra.mxu1 %v2619_v52 }
 0x4d9   :  { %1982 = vmatprep.subr.mxu1 %v2625_v54 }
 0x4dc   :  { %1983 = vmatpush3.xpose.msra.mxu1 %v2625_v54  ;;  %v1082_v54 = vmul.f32 0.1, %v2726_v13 }
 0x4dd   :  { %1984 = vmatprep.subr.mxu1 %v2631_v56 }
 0x4de   :  { %v1086_v45 = vsub.f32 %v2726_v13, %v1082_v54 }
 0x4e0   :  { %1985 = vmatpush3.xpose.msra.mxu1 %v2631_v56 }
 0x4e1   :  { %1986 = vmatprep.subr.mxu1 %v2637_v59 }
 0x4e4   :  { %1987 = vmatpush3.xpose.msra.mxu1 %v2637_v59 }
 0x4e5   :  { %1988 = vmatprep.subr.mxu1 %v2643_v27 }
 0x4e8   :  { %1989 = vmatpush3.xpose.msra.mxu1 %v2643_v27  ;;  %v364_v27 = vadd.f32 %v2771_v11, %v2493_v19 }
 0x4e9   :  { %1990 = vmatprep.subr.mxu1 %v2649_v63 }
 0x4ec   :  { %1991 = vmatpush3.xpose.msra.mxu1 %v2649_v63  ;;  %v1081_v63 = vmul.f32 0.1, %v2728_v16 }
 0x4ee   :  { %v1085_v1 = vsub.f32 %v2728_v16, %v1081_v63 }
 0x56f   :  { %v1918_v5 = vpop.f32.mrf.mxu1 }
 0x570   :  { %v1198_v7 = vadd.f32 %v1918_v5, %v354_v9 }
 0x571   :  { %v1178_v35 = vpop.f32.mrf.mxu1 }
 0x572   :  { %v1202_v25 = vsub.f32 %v1198_v7, %v1084_v34  ;;  %v1197_v52 = vadd.f32 %v1178_v35, %v349_v14 }
 0x574   :  { %v1206_v56 = vmax.f32 %v1202_v25, 0.0  ;;  %v1201_v59 = vsub.f32 %v1197_v52, %v1083_v26 }
 0x576   :  { %v1210_v58 = vmul.f32 0.2, %v1206_v56  ;;  %2048 = vtanh.f32 %v1206_v56  ;;  %v1205_v6 = vmax.f32 %v1201_v59, 0.0 }
 0x577   :  { %v1921_v38 = vpop.f32.mrf.mxu1 }
 0x578   :  { %v1209_v49 = vmul.f32 0.2, %v1205_v6  ;;  %2050 = vtanh.f32 %v1205_v6  ;;  %v1200_v4 = vadd.f32 %v1921_v38, %v364_v27  ;;  %v1214_v41 = vadd.f32 %v1210_v58, %v1084_v34 }
 0x579   :  { %v1188_v43 = vpop.f32.mrf.mxu1 }
 0x57a   :  { %v1204_v39 = vsub.f32 %v1200_v4, %v1086_v45  ;;  %v1199_v19 = vadd.f32 %v1188_v43, %v359_v51  ;;  %v1213_v18 = vadd.f32 %v1209_v49, %v1083_v26  ;;  %v1218_v37 = vmul.f32 0.1, %v1214_v41 }
 0x57b   :  { %v394_v4 = vadd.f32 %v2771_v11, %v2529_v30 }
 0x57c   :  { %v1208_v60 = vmax.f32 %v1204_v39, 0.0  ;;  %v1203_v17 = vsub.f32 %v1199_v19, %v1085_v1  ;;  %v1217_v53 = vmul.f32 0.1, %v1213_v18  ;;  %v1222_v44 = vsub.f32 %v1214_v41, %v1218_v37 }
 0x57d   :  { %v389_v39 = vadd.f32 %v2771_v11, %v2527_v21 }
 0x57e   :  { %v1212_v55 = vmul.f32 0.2, %v1208_v60  ;;  %2052 = vtanh.f32 %v1208_v60  ;;  %v1207_v57 = vmax.f32 %v1203_v17, 0.0  ;;  %v1221_v13 = vsub.f32 %v1213_v18, %v1217_v53 }
 0x580   :  { %v1211_v47 = vmul.f32 0.2, %v1207_v57  ;;  %2054 = vtanh.f32 %v1207_v57  ;;  %v1216_v15 = vadd.f32 %v1212_v55, %v1086_v45 }
 0x582   :  { %v1215_v20 = vadd.f32 %v1211_v47, %v1085_v1  ;;  %v1220_v24 = vmul.f32 0.1, %v1216_v15 }
 0x583   :  { %v2049_v3 = vpop.eup %2048 }
 0x584   :  { %1231 = vst [vmem:[#allocation10 + $0xa8] sm:$0xff] %v2049_v3  ;;  %v1219_v9 = vmul.f32 0.1, %v1215_v20  ;;  %v1224_v23 = vsub.f32 %v1216_v15, %v1220_v24 }
 0x585   :  { %v2051_v40 = vpop.eup %2050 }
 0x586   :  { %1230 = vst [vmem:[#allocation10 + $0xa0] sm:$0xff] %v2051_v40  ;;  %1954 = vmatprep.mubr.f32.mxu0 %v2051_v40  ;;  %v1223_v26 = vsub.f32 %v1215_v20, %v1219_v9  ;;  %v404_v20 = vadd.f32 %v2771_v11, %v2533_v42 }
 0x587   :  { %1955 = vmatmul.mubr.f32.vlgmr.msra.gmra.mxu0 %v2049_v3 }
 0x58b   :  { %v2053_v8 = vpop.eup %2052 }
 0x58c   :  { %1233 = vst [vmem:[#allocation10 + $0xb8] sm:$0xff] %v2053_v8 }
 0x58d   :  { %v2055_v12 = vpop.eup %2054 }
 0x58e   :  { %1232 = vst [vmem:[#allocation10 + $0xb0] sm:$0xff] %v2055_v12  ;;  %1957 = vmatprep.mubr.f32.mxu0 %v2055_v12 }
 0x58f   :  { %1958 = vmatmul.mubr.f32.gmra.mxu0 %v2053_v8  ;;  %v399_v8 = vadd.f32 %v2771_v11, %v2531_v36 }
 0x647   :  { %v1956_v28 = vpop.f32.mrf.mxu0 }
 0x648   :  { %v1336_v61 = vadd.f32 %v1956_v28, %v374_v2 }
 0x649   :  { %v1316_v31 = vpop.f32.mrf.mxu0 }
 0x64a   :  { %v1340_v62 = vsub.f32 %v1336_v61, %v1222_v44  ;;  %v1335_v16 = vadd.f32 %v1316_v31, %v369_v50 }
 0x64c   :  { %v1344_v46 = vmax.f32 %v1340_v62, 0.0  ;;  %v1339_v22 = vsub.f32 %v1335_v16, %v1221_v13 }
 0x64e   :  { %v1348_v48 = vmul.f32 0.2, %v1344_v46  ;;  %2056 = vtanh.f32 %v1344_v46  ;;  %v1343_v29 = vmax.f32 %v1339_v22, 0.0 }
 0x64f   :  { %v1959_v5 = vpop.f32.mrf.mxu0 }
 0x650   :  { %v1347_v14 = vmul.f32 0.2, %v1343_v29  ;;  %2058 = vtanh.f32 %v1343_v29  ;;  %v1338_v34 = vadd.f32 %v1959_v5, %v384_v33  ;;  %v1352_v7 = vadd.f32 %v1348_v48, %v1222_v44 }
 0x651   :  { %v1326_v35 = vpop.f32.mrf.mxu0 }
 0x652   :  { %v1342_v25 = vsub.f32 %v1338_v34, %v1224_v23  ;;  %v1337_v52 = vadd.f32 %v1326_v35, %v379_v0  ;;  %v1351_v54 = vadd.f32 %v1347_v14, %v1221_v13  ;;  %v1356_v49 = vmul.f32 0.1, %v1352_v7 }
 0x654   :  { %v1346_v56 = vmax.f32 %v1342_v25, 0.0  ;;  %v1341_v10 = vsub.f32 %v1337_v52, %v1223_v26  ;;  %v1355_v41 = vmul.f32 0.1, %v1351_v54  ;;  %v1360_v1 = vsub.f32 %v1352_v7, %v1356_v49 }
 0x656   :  { %v1350_v59 = vmul.f32 0.2, %v1346_v56  ;;  %2060 = vtanh.f32 %v1346_v56  ;;  %v1345_v27 = vmax.f32 %v1341_v10, 0.0  ;;  %v1359_v17 = vsub.f32 %v1351_v54, %v1355_v41 }
 0x658   :  { %v1349_v58 = vmul.f32 0.2, %v1345_v27  ;;  %2062 = vtanh.f32 %v1345_v27  ;;  %v1354_v6 = vadd.f32 %v1350_v59, %v1224_v23 }
 0x65a   :  { %v1353_v32 = vadd.f32 %v1349_v58, %v1223_v26  ;;  %v1358_v15 = vmul.f32 0.1, %v1354_v6 }
 0x65b   :  { %v2057_v63 = vpop.eup %2056 }
 0x65c   :  { %1369 = vst [vmem:[#allocation10 + $0xc8] sm:$0xff] %v2057_v63  ;;  %v1357_v30 = vmul.f32 0.1, %v1353_v32  ;;  %v1362_v21 = vsub.f32 %v1354_v6, %v1358_v15 }
 0x65d   :  { %v2059_v51 = vpop.eup %2058 }
 0x65e   :  { %1368 = vst [vmem:[#allocation10 + $0xc0] sm:$0xff] %v2059_v51  ;;  %1992 = vmatprep.mubr.f32.mxu1 %v2059_v51  ;;  %v1361_v53 = vsub.f32 %v1353_v32, %v1357_v30 }
 0x65f   :  { %1993 = vmatmul.mubr.f32.vlgmr.msra.gmra.mxu1 %v2057_v63 }
 0x663   :  { %v2061_v45 = vpop.eup %2060 }
 0x664   :  { %1371 = vst [vmem:[#allocation10 + $0xd8] sm:$0xff] %v2061_v45 }
 0x665   :  { %v2063_v38 = vpop.eup %2062 }
 0x666   :  { %1370 = vst [vmem:[#allocation10 + $0xd0] sm:$0xff] %v2063_v38  ;;  %1995 = vmatprep.mubr.f32.mxu1 %v2063_v38 }
 0x667   :  { %1996 = vmatmul.mubr.f32.gmra.mxu1 %v2061_v45 }
 0x71f   :  { %v1994_v43 = vpop.f32.mrf.mxu1 }
 0x720   :  { %v1474_v19 = vadd.f32 %v1994_v43, %v394_v4 }
 0x721   :  { %v1454_v18 = vpop.f32.mrf.mxu1 }
 0x722   :  { %v1478_v60 = vsub.f32 %v1474_v19, %v1360_v1  ;;  %v1473_v55 = vadd.f32 %v1454_v18, %v389_v39 }
 0x724   :  { %v1482_v57 = vmax.f32 %v1478_v60, 0.0  ;;  %v1477_v47 = vsub.f32 %v1473_v55, %v1359_v17 }
 0x726   :  { %2064 = vtanh.f32 %v1482_v57  ;;  %v1481_v3 = vmax.f32 %v1477_v47, 0.0 }
 0x727   :  { %v1997_v40 = vpop.f32.mrf.mxu1 }
 0x728   :  { %2066 = vtanh.f32 %v1481_v3  ;;  %v1476_v12 = vadd.f32 %v1997_v40, %v404_v20 }
 0x729   :  { %v1464_v37 = vpop.f32.mrf.mxu1 }
 0x72a   :  { %v1480_v2 = vsub.f32 %v1476_v12, %v1362_v21  ;;  %v1475_v28 = vadd.f32 %v1464_v37, %v399_v8 }
 0x72c   :  { %v1484_v50 = vmax.f32 %v1480_v2, 0.0  ;;  %v1479_v44 = vsub.f32 %v1475_v28, %v1361_v53 }
 0x72e   :  { %2068 = vtanh.f32 %v1484_v50  ;;  %v1483_v61 = vmax.f32 %v1479_v44, 0.0 }
 0x730   :  { %2070 = vtanh.f32 %v1483_v61 }
 0x733   :  { %v2065_v42 = vpop.eup %2064 }
 0x734   :  { %1491 = vst [vmem:[#allocation10 + $0xe8] sm:$0xff] %v2065_v42  ;;  %1495 = vst [vmem:[#allocation11 + $0x8] sm:$0xff] %v2065_v42 }
 0x735   :  { %v2067_v31 = vpop.eup %2066 }
 0x736   :  { %1490 = vst [vmem:[#allocation10 + $0xe0] sm:$0xff] %v2067_v31  ;;  %1494 = vst [vmem:[#allocation11] sm:$0xff] %v2067_v31 }
 0x73b   :  { %v2069_v36 = vpop.eup %2068 }
 0x73c   :  { %1493 = vst [vmem:[#allocation10 + $0xf8] sm:$0xff] %v2069_v36  ;;  %1497 = vst [vmem:[#allocation11 + $0x18] sm:$0xff] %v2069_v36 }
 0x73d   :  { %v2071_v11 = vpop.eup %2070 }
 0x73e   :  { %1492 = vst [vmem:[#allocation10 + $0xf0] sm:$0xff] %v2071_v11  ;;  %1496 = vst [vmem:[#allocation11 + $0x10] sm:$0xff] %v2071_v11 }
 0x73f   :  { %2164 = shalt.err (!%p2161_p10)
}
 0x740   :  { %1509 = dma.vmem_to_hbm [thread:$0]  %s1504_s21, 4096, %s2813_s5, [#allocation4], %s2204_s24, %s2204_s24, %s2205_s25  }
 0x741   :  { %s2173_s29 = scalar_lea.vmem %s1516_s23, 512  ;;  %p2178_p12 = scmp.lt.s32.totalorder %s1516_s23, %s1516_s23 }
 0x742   :  { %p2174_p11 = scmp.ne.s32.totalorder %s1516_s23, %s2173_s29  ;;  %p2179_p13 = scmp.lt.s32.totalorder %s2173_s29, %s2173_s29 }
 0x744   :  { %p2180_p0 = por %p2179_p13, %p2178_p12 }
 0x746   :  { %p2181_p1 = pnand %p2180_p0, %p2174_p11 }
 0x748   :  { %2184 = shalt.err (!%p2181_p1)
}
 0x749   :  { %1521 = dma.vmem_to_hbm [thread:$0]  %s1516_s23, 512, %s2814_s6, [#allocation12], %s2204_s24, %s2204_s24, %s2205_s25  }
 0x74a   :  { %2199 = dma.done.wait [#allocation4], 4096  }
 0x74b   :  { %2200 = vsyncadd [#allocation4], 4294963200 }
 0x74c   :  { %2201 = dma.done.wait [#allocation12], 512  }
 0x74d   :  { %2202 = vsyncadd [#allocation12], 4294966784 }
 0x74e   :  { %1528 = vsyncpa [#allocation3], 1 }
 0x74f   :  { %1529 = vsyncpa [#allocation6], 1 }
 0x750   :  { %1530 = vsyncpa [#allocation9], 1 }
 0x751   :  { %1531 = vsyncpa [#allocation4], 1 }
 0x752   :  { %1532 = vsyncpa [#allocation12], 1 }

</bundles_post_ra>
